<compile_context>
chip_gen: v7x
topology: tpu7x:2x2x1
jax: 0.10.0
libtpu: 0.0.40
codegen_flags: <defaults>
</compile_context>

<pallas_src>
import jax
import jax.numpy as jnp
from jax.experimental import pallas as pl
from jax.experimental.pallas import tpu as pltpu


def _feature_nn_kernel(params_ref, x_ref, o_ref):
    """params_ref: (3, H) f32 in SMEM (row 0 = W1, row 1 = b1, row 2 = Wout).
       x_ref, o_ref: (TM, 128) f32 in VMEM; batch laid out on sublanes+lanes."""
    x = x_ref[...]                                   # (TM, 128)
    num_hidden = params_ref.shape[1]                 # H (static)

    acc = jnp.zeros_like(x)
    # Fully unrolled FMA loop over hidden units: pure VPU on full 128-lane
    # vregs, scalar weights broadcast from SMEM.
    for h in range(num_hidden):
        w1_h = params_ref[0, h]
        b1_h = params_ref[1, h]
        wo_h = params_ref[2, h]
        acc = acc + wo_h * jnp.maximum(x * w1_h + b1_h, 0.0)

    # TODO(synk): dropout(p=0.5) is identity at inference (eval mode); the
    # stochastic train-time mask is not implemented here.
    o_ref[...] = acc


def feature_nn_forward(x, w1, b1, wout, *, tm=512):
    """Eval-mode forward of FeatureNN_Base (shallow, ReLU first layer,
    num_classes=1).  x: (N,) float32 -> (N, 1) float32."""
    N = x.shape[0]
    H = w1.shape[1]
    assert wout.shape == (1, H), "kernel is specialized to num_classes == 1"
    # TODO(synk): num_classes > 1, non-shallow stacks and ExU layers are not
    # covered by this kernel (default module config only).

    # ---- lane-dense batch layout: pad N and reshape to (rows, 128) ----------
    rows = pl.cdiv(N, 128)                        # rows of 128 batch elements
    tm = max(8, min(tm, pl.cdiv(rows, 8) * 8))    # row tile: multiple of 8
    rows_padded = pl.cdiv(rows, tm) * tm
    n_pad = rows_padded * 128

    x_flat = jnp.pad(x.astype(jnp.float32), (0, n_pad - N))
    x2 = x_flat.reshape(rows_padded, 128)

    # ---- pack the three tiny parameter vectors into one SMEM table ----------
    params = jnp.concatenate(
        [w1.reshape(1, H), b1.reshape(1, H), wout.reshape(1, H)],
        axis=0).astype(jnp.float32)               # (3, H)

    grid = (rows_padded // tm,)
    out2 = pl.pallas_call(
        _feature_nn_kernel,
        out_shape=jax.ShapeDtypeStruct((rows_padded, 128), jnp.float32),
        grid=grid,
        in_specs=[
            # whole (3, H) weight table, resident in SMEM for scalar reads
            pl.BlockSpec(memory_space=pltpu.MemorySpace.SMEM),
            # batch tiles, pipelined over the grid
            pl.BlockSpec((tm, 128), lambda i: (i, 0)),
        ],
        out_specs=pl.BlockSpec((tm, 128), lambda i: (i, 0)),
        compiler_params=pltpu.CompilerParams(
            dimension_semantics=("parallel",)),
    )(params, x2)

    # drop the padded batch elements -> exact (N, 1) semantics
    return out2.reshape(n_pad, 1)[:N]


def init_params(key, num_units=64, num_classes=1):
    """Deterministic synthetic parameter init (shapes match the torch module)."""
    k1, k2, k3 = jax.random.split(key, 3)
    in_features = 1
    bound1 = (6.0 / (in_features + num_units)) ** 0.5
    w1 = jax.random.uniform(k1, (in_features, num_units), jnp.float32,
                            minval=-bound1, maxval=bound1)
    b1 = 0.01 * jax.random.normal(k2, (1, num_units), jnp.float32)
    bound2 = (6.0 / (num_units + num_classes)) ** 0.5
    wout = jax.random.uniform(k3, (num_classes, num_units), jnp.float32,
                              minval=-bound2, maxval=bound2)
    return w1, b1, wout


def feature_nn_reference(x, w1, b1, wout):
    """Pure-JAX reference of the eval-mode forward pass."""
    x2 = x.reshape(-1, 1)
    h = jnp.maximum(x2 @ w1 + b1, 0.0)
    return h @ wout.T


if __name__ == "__main__":
    key = jax.random.PRNGKey(0)
    kx1, kx2, kp = jax.random.split(key, 3)

    H = 64                                     # default num_units
    w1, b1, wout = init_params(kp, num_units=H, num_classes=1)

    # Case 1: tiny batch (like a single NAM feature column), single tile.
    N1 = 8
    x1 = jax.random.normal(kx1, (N1,), jnp.float32)
    out1 = jax.block_until_ready(feature_nn_forward(x1, w1, b1, wout))
    ref1 = feature_nn_reference(x1, w1, b1, wout)
    assert out1.shape == (N1, 1)
    assert jnp.allclose(out1, ref1, atol=1e-4, rtol=1e-4)

    # Case 2: batch that is not a multiple of the tile -> multi-tile grid with
    # padded rows sliced off (exercises the pipelined / parallel grid path).
    N2 = 2500
    x2 = jax.random.normal(kx2, (N2,), jnp.float32)
    out2 = jax.block_until_ready(feature_nn_forward(x2, w1, b1, wout, tm=8))
    ref2 = feature_nn_reference(x2, w1, b1, wout)
    assert out2.shape == (N2, 1)
    assert jnp.allclose(out2, ref2, atol=1e-4, rtol=1e-4)

    print("KERNEL_OK")
</pallas_src>

<mosaic_0001>
module attributes {stable_mosaic.version = 11 : i64} {
  func.func @_feature_nn_kernel(%arg0: i32, %arg1: memref<3x64xf32, #tpu.memory_space<smem>>, %arg2: memref<8x128xf32, #tpu.memory_space<vmem>>, %arg3: memref<8x128xf32, #tpu.memory_space<vmem>>) attributes {dimension_semantics = [#tpu.dimension_semantics<parallel>], iteration_bounds = array<i64: 1>, scalar_prefetch = 0 : i64, scratch_operands = 0 : i64, tpu.core_type = #tpu.core_type<tc>, window_params = [{transform_indices = @transform_0, window_bounds = array<i64: 3, 64>}, {transform_indices = @transform_1, window_bounds = array<i64: 8, 128>}, {transform_indices = @transform_2, window_bounds = array<i64: 8, 128>}]} {
    %c0 = arith.constant 0 : index
    %c0_0 = arith.constant 0 : index
    %0 = vector.load %arg2[%c0, %c0_0] : memref<8x128xf32, #tpu.memory_space<vmem>>, vector<8x128xf32>
    %cst = arith.constant 0.000000e+00 : f32
    %1 = vector.broadcast %cst : f32 to vector<8x128xf32>
    %c0_1 = arith.constant 0 : index
    %c0_2 = arith.constant 0 : index
    %2 = memref.load %arg1[%c0_1, %c0_2] : memref<3x64xf32, #tpu.memory_space<smem>>
    %c1 = arith.constant 1 : index
    %c0_3 = arith.constant 0 : index
    %3 = memref.load %arg1[%c1, %c0_3] : memref<3x64xf32, #tpu.memory_space<smem>>
    %c2 = arith.constant 2 : index
    %c0_4 = arith.constant 0 : index
    %4 = memref.load %arg1[%c2, %c0_4] : memref<3x64xf32, #tpu.memory_space<smem>>
    %5 = vector.broadcast %2 : f32 to vector<8x128xf32>
    %6 = arith.mulf %0, %5 : vector<8x128xf32>
    %7 = vector.broadcast %3 : f32 to vector<8x128xf32>
    %8 = arith.addf %6, %7 : vector<8x128xf32>
    %cst_5 = arith.constant 0.000000e+00 : f32
    %9 = vector.broadcast %cst_5 : f32 to vector<8x128xf32>
    %10 = arith.maximumf %8, %9 : vector<8x128xf32>
    %11 = vector.broadcast %4 : f32 to vector<8x128xf32>
    %12 = arith.mulf %11, %10 : vector<8x128xf32>
    %13 = arith.addf %1, %12 : vector<8x128xf32>
    %c0_6 = arith.constant 0 : index
    %c1_7 = arith.constant 1 : index
    %14 = memref.load %arg1[%c0_6, %c1_7] : memref<3x64xf32, #tpu.memory_space<smem>>
    %c1_8 = arith.constant 1 : index
    %c1_9 = arith.constant 1 : index
    %15 = memref.load %arg1[%c1_8, %c1_9] : memref<3x64xf32, #tpu.memory_space<smem>>
    %c2_10 = arith.constant 2 : index
    %c1_11 = arith.constant 1 : index
    %16 = memref.load %arg1[%c2_10, %c1_11] : memref<3x64xf32, #tpu.memory_space<smem>>
    %17 = vector.broadcast %14 : f32 to vector<8x128xf32>
    %18 = arith.mulf %0, %17 : vector<8x128xf32>
    %19 = vector.broadcast %15 : f32 to vector<8x128xf32>
    %20 = arith.addf %18, %19 : vector<8x128xf32>
    %cst_12 = arith.constant 0.000000e+00 : f32
    %21 = vector.broadcast %cst_12 : f32 to vector<8x128xf32>
    %22 = arith.maximumf %20, %21 : vector<8x128xf32>
    %23 = vector.broadcast %16 : f32 to vector<8x128xf32>
    %24 = arith.mulf %23, %22 : vector<8x128xf32>
    %25 = arith.addf %13, %24 : vector<8x128xf32>
    %c0_13 = arith.constant 0 : index
    %c2_14 = arith.constant 2 : index
    %26 = memref.load %arg1[%c0_13, %c2_14] : memref<3x64xf32, #tpu.memory_space<smem>>
    %c1_15 = arith.constant 1 : index
    %c2_16 = arith.constant 2 : index
    %27 = memref.load %arg1[%c1_15, %c2_16] : memref<3x64xf32, #tpu.memory_space<smem>>
    %c2_17 = arith.constant 2 : index
    %c2_18 = arith.constant 2 : index
    %28 = memref.load %arg1[%c2_17, %c2_18] : memref<3x64xf32, #tpu.memory_space<smem>>
    %29 = vector.broadcast %26 : f32 to vector<8x128xf32>
    %30 = arith.mulf %0, %29 : vector<8x128xf32>
    %31 = vector.broadcast %27 : f32 to vector<8x128xf32>
    %32 = arith.addf %30, %31 : vector<8x128xf32>
    %cst_19 = arith.constant 0.000000e+00 : f32
    %33 = vector.broadcast %cst_19 : f32 to vector<8x128xf32>
    %34 = arith.maximumf %32, %33 : vector<8x128xf32>
    %35 = vector.broadcast %28 : f32 to vector<8x128xf32>
    %36 = arith.mulf %35, %34 : vector<8x128xf32>
    %37 = arith.addf %25, %36 : vector<8x128xf32>
    %c0_20 = arith.constant 0 : index
    %c3 = arith.constant 3 : index
    %38 = memref.load %arg1[%c0_20, %c3] : memref<3x64xf32, #tpu.memory_space<smem>>
    %c1_21 = arith.constant 1 : index
    %c3_22 = arith.constant 3 : index
    %39 = memref.load %arg1[%c1_21, %c3_22] : memref<3x64xf32, #tpu.memory_space<smem>>
    %c2_23 = arith.constant 2 : index
    %c3_24 = arith.constant 3 : index
    %40 = memref.load %arg1[%c2_23, %c3_24] : memref<3x64xf32, #tpu.memory_space<smem>>
    %41 = vector.broadcast %38 : f32 to vector<8x128xf32>
    %42 = arith.mulf %0, %41 : vector<8x128xf32>
    %43 = vector.broadcast %39 : f32 to vector<8x128xf32>
    %44 = arith.addf %42, %43 : vector<8x128xf32>
    %cst_25 = arith.constant 0.000000e+00 : f32
    %45 = vector.broadcast %cst_25 : f32 to vector<8x128xf32>
    %46 = arith.maximumf %44, %45 : vector<8x128xf32>
    %47 = vector.broadcast %40 : f32 to vector<8x128xf32>
    %48 = arith.mulf %47, %46 : vector<8x128xf32>
    %49 = arith.addf %37, %48 : vector<8x128xf32>
    %c0_26 = arith.constant 0 : index
    %c4 = arith.constant 4 : index
    %50 = memref.load %arg1[%c0_26, %c4] : memref<3x64xf32, #tpu.memory_space<smem>>
    %c1_27 = arith.constant 1 : index
    %c4_28 = arith.constant 4 : index
    %51 = memref.load %arg1[%c1_27, %c4_28] : memref<3x64xf32, #tpu.memory_space<smem>>
    %c2_29 = arith.constant 2 : index
    %c4_30 = arith.constant 4 : index
    %52 = memref.load %arg1[%c2_29, %c4_30] : memref<3x64xf32, #tpu.memory_space<smem>>
    %53 = vector.broadcast %50 : f32 to vector<8x128xf32>
    %54 = arith.mulf %0, %53 : vector<8x128xf32>
    %55 = vector.broadcast %51 : f32 to vector<8x128xf32>
    %56 = arith.addf %54, %55 : vector<8x128xf32>
    %cst_31 = arith.constant 0.000000e+00 : f32
    %57 = vector.broadcast %cst_31 : f32 to vector<8x128xf32>
    %58 = arith.maximumf %56, %57 : vector<8x128xf32>
    %59 = vector.broadcast %52 : f32 to vector<8x128xf32>
    %60 = arith.mulf %59, %58 : vector<8x128xf32>
    %61 = arith.addf %49, %60 : vector<8x128xf32>
    %c0_32 = arith.constant 0 : index
    %c5 = arith.constant 5 : index
    %62 = memref.load %arg1[%c0_32, %c5] : memref<3x64xf32, #tpu.memory_space<smem>>
    %c1_33 = arith.constant 1 : index
    %c5_34 = arith.constant 5 : index
    %63 = memref.load %arg1[%c1_33, %c5_34] : memref<3x64xf32, #tpu.memory_space<smem>>
    %c2_35 = arith.constant 2 : index
    %c5_36 = arith.constant 5 : index
    %64 = memref.load %arg1[%c2_35, %c5_36] : memref<3x64xf32, #tpu.memory_space<smem>>
    %65 = vector.broadcast %62 : f32 to vector<8x128xf32>
    %66 = arith.mulf %0, %65 : vector<8x128xf32>
    %67 = vector.broadcast %63 : f32 to vector<8x128xf32>
    %68 = arith.addf %66, %67 : vector<8x128xf32>
    %cst_37 = arith.constant 0.000000e+00 : f32
    %69 = vector.broadcast %cst_37 : f32 to vector<8x128xf32>
    %70 = arith.maximumf %68, %69 : vector<8x128xf32>
    %71 = vector.broadcast %64 : f32 to vector<8x128xf32>
    %72 = arith.mulf %71, %70 : vector<8x128xf32>
    %73 = arith.addf %61, %72 : vector<8x128xf32>
    %c0_38 = arith.constant 0 : index
    %c6 = arith.constant 6 : index
    %74 = memref.load %arg1[%c0_38, %c6] : memref<3x64xf32, #tpu.memory_space<smem>>
    %c1_39 = arith.constant 1 : index
    %c6_40 = arith.constant 6 : index
    %75 = memref.load %arg1[%c1_39, %c6_40] : memref<3x64xf32, #tpu.memory_space<smem>>
    %c2_41 = arith.constant 2 : index
    %c6_42 = arith.constant 6 : index
    %76 = memref.load %arg1[%c2_41, %c6_42] : memref<3x64xf32, #tpu.memory_space<smem>>
    %77 = vector.broadcast %74 : f32 to vector<8x128xf32>
    %78 = arith.mulf %0, %77 : vector<8x128xf32>
    %79 = vector.broadcast %75 : f32 to vector<8x128xf32>
    %80 = arith.addf %78, %79 : vector<8x128xf32>
    %cst_43 = arith.constant 0.000000e+00 : f32
    %81 = vector.broadcast %cst_43 : f32 to vector<8x128xf32>
    %82 = arith.maximumf %80, %81 : vector<8x128xf32>
    %83 = vector.broadcast %76 : f32 to vector<8x128xf32>
    %84 = arith.mulf %83, %82 : vector<8x128xf32>
    %85 = arith.addf %73, %84 : vector<8x128xf32>
    %c0_44 = arith.constant 0 : index
    %c7 = arith.constant 7 : index
    %86 = memref.load %arg1[%c0_44, %c7] : memref<3x64xf32, #tpu.memory_space<smem>>
    %c1_45 = arith.constant 1 : index
    %c7_46 = arith.constant 7 : index
    %87 = memref.load %arg1[%c1_45, %c7_46] : memref<3x64xf32, #tpu.memory_space<smem>>
    %c2_47 = arith.constant 2 : index
    %c7_48 = arith.constant 7 : index
    %88 = memref.load %arg1[%c2_47, %c7_48] : memref<3x64xf32, #tpu.memory_space<smem>>
    %89 = vector.broadcast %86 : f32 to vector<8x128xf32>
    %90 = arith.mulf %0, %89 : vector<8x128xf32>
    %91 = vector.broadcast %87 : f32 to vector<8x128xf32>
    %92 = arith.addf %90, %91 : vector<8x128xf32>
    %cst_49 = arith.constant 0.000000e+00 : f32
    %93 = vector.broadcast %cst_49 : f32 to vector<8x128xf32>
    %94 = arith.maximumf %92, %93 : vector<8x128xf32>
    %95 = vector.broadcast %88 : f32 to vector<8x128xf32>
    %96 = arith.mulf %95, %94 : vector<8x128xf32>
    %97 = arith.addf %85, %96 : vector<8x128xf32>
    %c0_50 = arith.constant 0 : index
    %c8 = arith.constant 8 : index
    %98 = memref.load %arg1[%c0_50, %c8] : memref<3x64xf32, #tpu.memory_space<smem>>
    %c1_51 = arith.constant 1 : index
    %c8_52 = arith.constant 8 : index
    %99 = memref.load %arg1[%c1_51, %c8_52] : memref<3x64xf32, #tpu.memory_space<smem>>
    %c2_53 = arith.constant 2 : index
    %c8_54 = arith.constant 8 : index
    %100 = memref.load %arg1[%c2_53, %c8_54] : memref<3x64xf32, #tpu.memory_space<smem>>
    %101 = vector.broadcast %98 : f32 to vector<8x128xf32>
    %102 = arith.mulf %0, %101 : vector<8x128xf32>
    %103 = vector.broadcast %99 : f32 to vector<8x128xf32>
    %104 = arith.addf %102, %103 : vector<8x128xf32>
    %cst_55 = arith.constant 0.000000e+00 : f32
    %105 = vector.broadcast %cst_55 : f32 to vector<8x128xf32>
    %106 = arith.maximumf %104, %105 : vector<8x128xf32>
    %107 = vector.broadcast %100 : f32 to vector<8x128xf32>
    %108 = arith.mulf %107, %106 : vector<8x128xf32>
    %109 = arith.addf %97, %108 : vector<8x128xf32>
    %c0_56 = arith.constant 0 : index
    %c9 = arith.constant 9 : index
    %110 = memref.load %arg1[%c0_56, %c9] : memref<3x64xf32, #tpu.memory_space<smem>>
    %c1_57 = arith.constant 1 : index
    %c9_58 = arith.constant 9 : index
    %111 = memref.load %arg1[%c1_57, %c9_58] : memref<3x64xf32, #tpu.memory_space<smem>>
    %c2_59 = arith.constant 2 : index
    %c9_60 = arith.constant 9 : index
    %112 = memref.load %arg1[%c2_59, %c9_60] : memref<3x64xf32, #tpu.memory_space<smem>>
    %113 = vector.broadcast %110 : f32 to vector<8x128xf32>
    %114 = arith.mulf %0, %113 : vector<8x128xf32>
    %115 = vector.broadcast %111 : f32 to vector<8x128xf32>
    %116 = arith.addf %114, %115 : vector<8x128xf32>
    %cst_61 = arith.constant 0.000000e+00 : f32
    %117 = vector.broadcast %cst_61 : f32 to vector<8x128xf32>
    %118 = arith.maximumf %116, %117 : vector<8x128xf32>
    %119 = vector.broadcast %112 : f32 to vector<8x128xf32>
    %120 = arith.mulf %119, %118 : vector<8x128xf32>
    %121 = arith.addf %109, %120 : vector<8x128xf32>
    %c0_62 = arith.constant 0 : index
    %c10 = arith.constant 10 : index
    %122 = memref.load %arg1[%c0_62, %c10] : memref<3x64xf32, #tpu.memory_space<smem>>
    %c1_63 = arith.constant 1 : index
    %c10_64 = arith.constant 10 : index
    %123 = memref.load %arg1[%c1_63, %c10_64] : memref<3x64xf32, #tpu.memory_space<smem>>
    %c2_65 = arith.constant 2 : index
    %c10_66 = arith.constant 10 : index
    %124 = memref.load %arg1[%c2_65, %c10_66] : memref<3x64xf32, #tpu.memory_space<smem>>
    %125 = vector.broadcast %122 : f32 to vector<8x128xf32>
    %126 = arith.mulf %0, %125 : vector<8x128xf32>
    %127 = vector.broadcast %123 : f32 to vector<8x128xf32>
    %128 = arith.addf %126, %127 : vector<8x128xf32>
    %cst_67 = arith.constant 0.000000e+00 : f32
    %129 = vector.broadcast %cst_67 : f32 to vector<8x128xf32>
    %130 = arith.maximumf %128, %129 : vector<8x128xf32>
    %131 = vector.broadcast %124 : f32 to vector<8x128xf32>
    %132 = arith.mulf %131, %130 : vector<8x128xf32>
    %133 = arith.addf %121, %132 : vector<8x128xf32>
    %c0_68 = arith.constant 0 : index
    %c11 = arith.constant 11 : index
    %134 = memref.load %arg1[%c0_68, %c11] : memref<3x64xf32, #tpu.memory_space<smem>>
    %c1_69 = arith.constant 1 : index
    %c11_70 = arith.constant 11 : index
    %135 = memref.load %arg1[%c1_69, %c11_70] : memref<3x64xf32, #tpu.memory_space<smem>>
    %c2_71 = arith.constant 2 : index
    %c11_72 = arith.constant 11 : index
    %136 = memref.load %arg1[%c2_71, %c11_72] : memref<3x64xf32, #tpu.memory_space<smem>>
    %137 = vector.broadcast %134 : f32 to vector<8x128xf32>
    %138 = arith.mulf %0, %137 : vector<8x128xf32>
    %139 = vector.broadcast %135 : f32 to vector<8x128xf32>
    %140 = arith.addf %138, %139 : vector<8x128xf32>
    %cst_73 = arith.constant 0.000000e+00 : f32
    %141 = vector.broadcast %cst_73 : f32 to vector<8x128xf32>
    %142 = arith.maximumf %140, %141 : vector<8x128xf32>
    %143 = vector.broadcast %136 : f32 to vector<8x128xf32>
    %144 = arith.mulf %143, %142 : vector<8x128xf32>
    %145 = arith.addf %133, %144 : vector<8x128xf32>
    %c0_74 = arith.constant 0 : index
    %c12 = arith.constant 12 : index
    %146 = memref.load %arg1[%c0_74, %c12] : memref<3x64xf32, #tpu.memory_space<smem>>
    %c1_75 = arith.constant 1 : index
    %c12_76 = arith.constant 12 : index
    %147 = memref.load %arg1[%c1_75, %c12_76] : memref<3x64xf32, #tpu.memory_space<smem>>
    %c2_77 = arith.constant 2 : index
    %c12_78 = arith.constant 12 : index
    %148 = memref.load %arg1[%c2_77, %c12_78] : memref<3x64xf32, #tpu.memory_space<smem>>
    %149 = vector.broadcast %146 : f32 to vector<8x128xf32>
    %150 = arith.mulf %0, %149 : vector<8x128xf32>
    %151 = vector.broadcast %147 : f32 to vector<8x128xf32>
    %152 = arith.addf %150, %151 : vector<8x128xf32>
    %cst_79 = arith.constant 0.000000e+00 : f32
    %153 = vector.broadcast %cst_79 : f32 to vector<8x128xf32>
    %154 = arith.maximumf %152, %153 : vector<8x128xf32>
    %155 = vector.broadcast %148 : f32 to vector<8x128xf32>
    %156 = arith.mulf %155, %154 : vector<8x128xf32>
    %157 = arith.addf %145, %156 : vector<8x128xf32>
    %c0_80 = arith.constant 0 : index
    %c13 = arith.constant 13 : index
    %158 = memref.load %arg1[%c0_80, %c13] : memref<3x64xf32, #tpu.memory_space<smem>>
    %c1_81 = arith.constant 1 : index
    %c13_82 = arith.constant 13 : index
    %159 = memref.load %arg1[%c1_81, %c13_82] : memref<3x64xf32, #tpu.memory_space<smem>>
    %c2_83 = arith.constant 2 : index
    %c13_84 = arith.constant 13 : index
    %160 = memref.load %arg1[%c2_83, %c13_84] : memref<3x64xf32, #tpu.memory_space<smem>>
    %161 = vector.broadcast %158 : f32 to vector<8x128xf32>
    %162 = arith.mulf %0, %161 : vector<8x128xf32>
    %163 = vector.broadcast %159 : f32 to vector<8x128xf32>
    %164 = arith.addf %162, %163 : vector<8x128xf32>
    %cst_85 = arith.constant 0.000000e+00 : f32
    %165 = vector.broadcast %cst_85 : f32 to vector<8x128xf32>
    %166 = arith.maximumf %164, %165 : vector<8x128xf32>
    %167 = vector.broadcast %160 : f32 to vector<8x128xf32>
    %168 = arith.mulf %167, %166 : vector<8x128xf32>
    %169 = arith.addf %157, %168 : vector<8x128xf32>
    %c0_86 = arith.constant 0 : index
    %c14 = arith.constant 14 : index
    %170 = memref.load %arg1[%c0_86, %c14] : memref<3x64xf32, #tpu.memory_space<smem>>
    %c1_87 = arith.constant 1 : index
    %c14_88 = arith.constant 14 : index
    %171 = memref.load %arg1[%c1_87, %c14_88] : memref<3x64xf32, #tpu.memory_space<smem>>
    %c2_89 = arith.constant 2 : index
    %c14_90 = arith.constant 14 : index
    %172 = memref.load %arg1[%c2_89, %c14_90] : memref<3x64xf32, #tpu.memory_space<smem>>
    %173 = vector.broadcast %170 : f32 to vector<8x128xf32>
    %174 = arith.mulf %0, %173 : vector<8x128xf32>
    %175 = vector.broadcast %171 : f32 to vector<8x128xf32>
    %176 = arith.addf %174, %175 : vector<8x128xf32>
    %cst_91 = arith.constant 0.000000e+00 : f32
    %177 = vector.broadcast %cst_91 : f32 to vector<8x128xf32>
    %178 = arith.maximumf %176, %177 : vector<8x128xf32>
    %179 = vector.broadcast %172 : f32 to vector<8x128xf32>
    %180 = arith.mulf %179, %178 : vector<8x128xf32>
    %181 = arith.addf %169, %180 : vector<8x128xf32>
    %c0_92 = arith.constant 0 : index
    %c15 = arith.constant 15 : index
    %182 = memref.load %arg1[%c0_92, %c15] : memref<3x64xf32, #tpu.memory_space<smem>>
    %c1_93 = arith.constant 1 : index
    %c15_94 = arith.constant 15 : index
    %183 = memref.load %arg1[%c1_93, %c15_94] : memref<3x64xf32, #tpu.memory_space<smem>>
    %c2_95 = arith.constant 2 : index
    %c15_96 = arith.constant 15 : index
    %184 = memref.load %arg1[%c2_95, %c15_96] : memref<3x64xf32, #tpu.memory_space<smem>>
    %185 = vector.broadcast %182 : f32 to vector<8x128xf32>
    %186 = arith.mulf %0, %185 : vector<8x128xf32>
    %187 = vector.broadcast %183 : f32 to vector<8x128xf32>
    %188 = arith.addf %186, %187 : vector<8x128xf32>
    %cst_97 = arith.constant 0.000000e+00 : f32
    %189 = vector.broadcast %cst_97 : f32 to vector<8x128xf32>
    %190 = arith.maximumf %188, %189 : vector<8x128xf32>
    %191 = vector.broadcast %184 : f32 to vector<8x128xf32>
    %192 = arith.mulf %191, %190 : vector<8x128xf32>
    %193 = arith.addf %181, %192 : vector<8x128xf32>
    %c0_98 = arith.constant 0 : index
    %c16 = arith.constant 16 : index
    %194 = memref.load %arg1[%c0_98, %c16] : memref<3x64xf32, #tpu.memory_space<smem>>
    %c1_99 = arith.constant 1 : index
    %c16_100 = arith.constant 16 : index
    %195 = memref.load %arg1[%c1_99, %c16_100] : memref<3x64xf32, #tpu.memory_space<smem>>
    %c2_101 = arith.constant 2 : index
    %c16_102 = arith.constant 16 : index
    %196 = memref.load %arg1[%c2_101, %c16_102] : memref<3x64xf32, #tpu.memory_space<smem>>
    %197 = vector.broadcast %194 : f32 to vector<8x128xf32>
    %198 = arith.mulf %0, %197 : vector<8x128xf32>
    %199 = vector.broadcast %195 : f32 to vector<8x128xf32>
    %200 = arith.addf %198, %199 : vector<8x128xf32>
    %cst_103 = arith.constant 0.000000e+00 : f32
    %201 = vector.broadcast %cst_103 : f32 to vector<8x128xf32>
    %202 = arith.maximumf %200, %201 : vector<8x128xf32>
    %203 = vector.broadcast %196 : f32 to vector<8x128xf32>
    %204 = arith.mulf %203, %202 : vector<8x128xf32>
    %205 = arith.addf %193, %204 : vector<8x128xf32>
    %c0_104 = arith.constant 0 : index
    %c17 = arith.constant 17 : index
    %206 = memref.load %arg1[%c0_104, %c17] : memref<3x64xf32, #tpu.memory_space<smem>>
    %c1_105 = arith.constant 1 : index
    %c17_106 = arith.constant 17 : index
    %207 = memref.load %arg1[%c1_105, %c17_106] : memref<3x64xf32, #tpu.memory_space<smem>>
    %c2_107 = arith.constant 2 : index
    %c17_108 = arith.constant 17 : index
    %208 = memref.load %arg1[%c2_107, %c17_108] : memref<3x64xf32, #tpu.memory_space<smem>>
    %209 = vector.broadcast %206 : f32 to vector<8x128xf32>
    %210 = arith.mulf %0, %209 : vector<8x128xf32>
    %211 = vector.broadcast %207 : f32 to vector<8x128xf32>
    %212 = arith.addf %210, %211 : vector<8x128xf32>
    %cst_109 = arith.constant 0.000000e+00 : f32
    %213 = vector.broadcast %cst_109 : f32 to vector<8x128xf32>
    %214 = arith.maximumf %212, %213 : vector<8x128xf32>
    %215 = vector.broadcast %208 : f32 to vector<8x128xf32>
    %216 = arith.mulf %215, %214 : vector<8x128xf32>
    %217 = arith.addf %205, %216 : vector<8x128xf32>
    %c0_110 = arith.constant 0 : index
    %c18 = arith.constant 18 : index
    %218 = memref.load %arg1[%c0_110, %c18] : memref<3x64xf32, #tpu.memory_space<smem>>
    %c1_111 = arith.constant 1 : index
    %c18_112 = arith.constant 18 : index
    %219 = memref.load %arg1[%c1_111, %c18_112] : memref<3x64xf32, #tpu.memory_space<smem>>
    %c2_113 = arith.constant 2 : index
    %c18_114 = arith.constant 18 : index
    %220 = memref.load %arg1[%c2_113, %c18_114] : memref<3x64xf32, #tpu.memory_space<smem>>
    %221 = vector.broadcast %218 : f32 to vector<8x128xf32>
    %222 = arith.mulf %0, %221 : vector<8x128xf32>
    %223 = vector.broadcast %219 : f32 to vector<8x128xf32>
    %224 = arith.addf %222, %223 : vector<8x128xf32>
    %cst_115 = arith.constant 0.000000e+00 : f32
    %225 = vector.broadcast %cst_115 : f32 to vector<8x128xf32>
    %226 = arith.maximumf %224, %225 : vector<8x128xf32>
    %227 = vector.broadcast %220 : f32 to vector<8x128xf32>
    %228 = arith.mulf %227, %226 : vector<8x128xf32>
    %229 = arith.addf %217, %228 : vector<8x128xf32>
    %c0_116 = arith.constant 0 : index
    %c19 = arith.constant 19 : index
    %230 = memref.load %arg1[%c0_116, %c19] : memref<3x64xf32, #tpu.memory_space<smem>>
    %c1_117 = arith.constant 1 : index
    %c19_118 = arith.constant 19 : index
    %231 = memref.load %arg1[%c1_117, %c19_118] : memref<3x64xf32, #tpu.memory_space<smem>>
    %c2_119 = arith.constant 2 : index
    %c19_120 = arith.constant 19 : index
    %232 = memref.load %arg1[%c2_119, %c19_120] : memref<3x64xf32, #tpu.memory_space<smem>>
    %233 = vector.broadcast %230 : f32 to vector<8x128xf32>
    %234 = arith.mulf %0, %233 : vector<8x128xf32>
    %235 = vector.broadcast %231 : f32 to vector<8x128xf32>
    %236 = arith.addf %234, %235 : vector<8x128xf32>
    %cst_121 = arith.constant 0.000000e+00 : f32
    %237 = vector.broadcast %cst_121 : f32 to vector<8x128xf32>
    %238 = arith.maximumf %236, %237 : vector<8x128xf32>
    %239 = vector.broadcast %232 : f32 to vector<8x128xf32>
    %240 = arith.mulf %239, %238 : vector<8x128xf32>
    %241 = arith.addf %229, %240 : vector<8x128xf32>
    %c0_122 = arith.constant 0 : index
    %c20 = arith.constant 20 : index
    %242 = memref.load %arg1[%c0_122, %c20] : memref<3x64xf32, #tpu.memory_space<smem>>
    %c1_123 = arith.constant 1 : index
    %c20_124 = arith.constant 20 : index
    %243 = memref.load %arg1[%c1_123, %c20_124] : memref<3x64xf32, #tpu.memory_space<smem>>
    %c2_125 = arith.constant 2 : index
    %c20_126 = arith.constant 20 : index
    %244 = memref.load %arg1[%c2_125, %c20_126] : memref<3x64xf32, #tpu.memory_space<smem>>
    %245 = vector.broadcast %242 : f32 to vector<8x128xf32>
    %246 = arith.mulf %0, %245 : vector<8x128xf32>
    %247 = vector.broadcast %243 : f32 to vector<8x128xf32>
    %248 = arith.addf %246, %247 : vector<8x128xf32>
    %cst_127 = arith.constant 0.000000e+00 : f32
    %249 = vector.broadcast %cst_127 : f32 to vector<8x128xf32>
    %250 = arith.maximumf %248, %249 : vector<8x128xf32>
    %251 = vector.broadcast %244 : f32 to vector<8x128xf32>
    %252 = arith.mulf %251, %250 : vector<8x128xf32>
    %253 = arith.addf %241, %252 : vector<8x128xf32>
    %c0_128 = arith.constant 0 : index
    %c21 = arith.constant 21 : index
    %254 = memref.load %arg1[%c0_128, %c21] : memref<3x64xf32, #tpu.memory_space<smem>>
    %c1_129 = arith.constant 1 : index
    %c21_130 = arith.constant 21 : index
    %255 = memref.load %arg1[%c1_129, %c21_130] : memref<3x64xf32, #tpu.memory_space<smem>>
    %c2_131 = arith.constant 2 : index
    %c21_132 = arith.constant 21 : index
    %256 = memref.load %arg1[%c2_131, %c21_132] : memref<3x64xf32, #tpu.memory_space<smem>>
    %257 = vector.broadcast %254 : f32 to vector<8x128xf32>
    %258 = arith.mulf %0, %257 : vector<8x128xf32>
    %259 = vector.broadcast %255 : f32 to vector<8x128xf32>
    %260 = arith.addf %258, %259 : vector<8x128xf32>
    %cst_133 = arith.constant 0.000000e+00 : f32
    %261 = vector.broadcast %cst_133 : f32 to vector<8x128xf32>
    %262 = arith.maximumf %260, %261 : vector<8x128xf32>
    %263 = vector.broadcast %256 : f32 to vector<8x128xf32>
    %264 = arith.mulf %263, %262 : vector<8x128xf32>
    %265 = arith.addf %253, %264 : vector<8x128xf32>
    %c0_134 = arith.constant 0 : index
    %c22 = arith.constant 22 : index
    %266 = memref.load %arg1[%c0_134, %c22] : memref<3x64xf32, #tpu.memory_space<smem>>
    %c1_135 = arith.constant 1 : index
    %c22_136 = arith.constant 22 : index
    %267 = memref.load %arg1[%c1_135, %c22_136] : memref<3x64xf32, #tpu.memory_space<smem>>
    %c2_137 = arith.constant 2 : index
    %c22_138 = arith.constant 22 : index
    %268 = memref.load %arg1[%c2_137, %c22_138] : memref<3x64xf32, #tpu.memory_space<smem>>
    %269 = vector.broadcast %266 : f32 to vector<8x128xf32>
    %270 = arith.mulf %0, %269 : vector<8x128xf32>
    %271 = vector.broadcast %267 : f32 to vector<8x128xf32>
    %272 = arith.addf %270, %271 : vector<8x128xf32>
    %cst_139 = arith.constant 0.000000e+00 : f32
    %273 = vector.broadcast %cst_139 : f32 to vector<8x128xf32>
    %274 = arith.maximumf %272, %273 : vector<8x128xf32>
    %275 = vector.broadcast %268 : f32 to vector<8x128xf32>
    %276 = arith.mulf %275, %274 : vector<8x128xf32>
    %277 = arith.addf %265, %276 : vector<8x128xf32>
    %c0_140 = arith.constant 0 : index
    %c23 = arith.constant 23 : index
    %278 = memref.load %arg1[%c0_140, %c23] : memref<3x64xf32, #tpu.memory_space<smem>>
    %c1_141 = arith.constant 1 : index
    %c23_142 = arith.constant 23 : index
    %279 = memref.load %arg1[%c1_141, %c23_142] : memref<3x64xf32, #tpu.memory_space<smem>>
    %c2_143 = arith.constant 2 : index
    %c23_144 = arith.constant 23 : index
    %280 = memref.load %arg1[%c2_143, %c23_144] : memref<3x64xf32, #tpu.memory_space<smem>>
    %281 = vector.broadcast %278 : f32 to vector<8x128xf32>
    %282 = arith.mulf %0, %281 : vector<8x128xf32>
    %283 = vector.broadcast %279 : f32 to vector<8x128xf32>
    %284 = arith.addf %282, %283 : vector<8x128xf32>
    %cst_145 = arith.constant 0.000000e+00 : f32
    %285 = vector.broadcast %cst_145 : f32 to vector<8x128xf32>
    %286 = arith.maximumf %284, %285 : vector<8x128xf32>
    %287 = vector.broadcast %280 : f32 to vector<8x128xf32>
    %288 = arith.mulf %287, %286 : vector<8x128xf32>
    %289 = arith.addf %277, %288 : vector<8x128xf32>
    %c0_146 = arith.constant 0 : index
    %c24 = arith.constant 24 : index
    %290 = memref.load %arg1[%c0_146, %c24] : memref<3x64xf32, #tpu.memory_space<smem>>
    %c1_147 = arith.constant 1 : index
    %c24_148 = arith.constant 24 : index
    %291 = memref.load %arg1[%c1_147, %c24_148] : memref<3x64xf32, #tpu.memory_space<smem>>
    %c2_149 = arith.constant 2 : index
    %c24_150 = arith.constant 24 : index
    %292 = memref.load %arg1[%c2_149, %c24_150] : memref<3x64xf32, #tpu.memory_space<smem>>
    %293 = vector.broadcast %290 : f32 to vector<8x128xf32>
    %294 = arith.mulf %0, %293 : vector<8x128xf32>
    %295 = vector.broadcast %291 : f32 to vector<8x128xf32>
    %296 = arith.addf %294, %295 : vector<8x128xf32>
    %cst_151 = arith.constant 0.000000e+00 : f32
    %297 = vector.broadcast %cst_151 : f32 to vector<8x128xf32>
    %298 = arith.maximumf %296, %297 : vector<8x128xf32>
    %299 = vector.broadcast %292 : f32 to vector<8x128xf32>
    %300 = arith.mulf %299, %298 : vector<8x128xf32>
    %301 = arith.addf %289, %300 : vector<8x128xf32>
    %c0_152 = arith.constant 0 : index
    %c25 = arith.constant 25 : index
    %302 = memref.load %arg1[%c0_152, %c25] : memref<3x64xf32, #tpu.memory_space<smem>>
    %c1_153 = arith.constant 1 : index
    %c25_154 = arith.constant 25 : index
    %303 = memref.load %arg1[%c1_153, %c25_154] : memref<3x64xf32, #tpu.memory_space<smem>>
    %c2_155 = arith.constant 2 : index
    %c25_156 = arith.constant 25 : index
    %304 = memref.load %arg1[%c2_155, %c25_156] : memref<3x64xf32, #tpu.memory_space<smem>>
    %305 = vector.broadcast %302 : f32 to vector<8x128xf32>
    %306 = arith.mulf %0, %305 : vector<8x128xf32>
    %307 = vector.broadcast %303 : f32 to vector<8x128xf32>
    %308 = arith.addf %306, %307 : vector<8x128xf32>
    %cst_157 = arith.constant 0.000000e+00 : f32
    %309 = vector.broadcast %cst_157 : f32 to vector<8x128xf32>
    %310 = arith.maximumf %308, %309 : vector<8x128xf32>
    %311 = vector.broadcast %304 : f32 to vector<8x128xf32>
    %312 = arith.mulf %311, %310 : vector<8x128xf32>
    %313 = arith.addf %301, %312 : vector<8x128xf32>
    %c0_158 = arith.constant 0 : index
    %c26 = arith.constant 26 : index
    %314 = memref.load %arg1[%c0_158, %c26] : memref<3x64xf32, #tpu.memory_space<smem>>
    %c1_159 = arith.constant 1 : index
    %c26_160 = arith.constant 26 : index
    %315 = memref.load %arg1[%c1_159, %c26_160] : memref<3x64xf32, #tpu.memory_space<smem>>
    %c2_161 = arith.constant 2 : index
    %c26_162 = arith.constant 26 : index
    %316 = memref.load %arg1[%c2_161, %c26_162] : memref<3x64xf32, #tpu.memory_space<smem>>
    %317 = vector.broadcast %314 : f32 to vector<8x128xf32>
    %318 = arith.mulf %0, %317 : vector<8x128xf32>
    %319 = vector.broadcast %315 : f32 to vector<8x128xf32>
    %320 = arith.addf %318, %319 : vector<8x128xf32>
    %cst_163 = arith.constant 0.000000e+00 : f32
    %321 = vector.broadcast %cst_163 : f32 to vector<8x128xf32>
    %322 = arith.maximumf %320, %321 : vector<8x128xf32>
    %323 = vector.broadcast %316 : f32 to vector<8x128xf32>
    %324 = arith.mulf %323, %322 : vector<8x128xf32>
    %325 = arith.addf %313, %324 : vector<8x128xf32>
    %c0_164 = arith.constant 0 : index
    %c27 = arith.constant 27 : index
    %326 = memref.load %arg1[%c0_164, %c27] : memref<3x64xf32, #tpu.memory_space<smem>>
    %c1_165 = arith.constant 1 : index
    %c27_166 = arith.constant 27 : index
    %327 = memref.load %arg1[%c1_165, %c27_166] : memref<3x64xf32, #tpu.memory_space<smem>>
    %c2_167 = arith.constant 2 : index
    %c27_168 = arith.constant 27 : index
    %328 = memref.load %arg1[%c2_167, %c27_168] : memref<3x64xf32, #tpu.memory_space<smem>>
    %329 = vector.broadcast %326 : f32 to vector<8x128xf32>
    %330 = arith.mulf %0, %329 : vector<8x128xf32>
    %331 = vector.broadcast %327 : f32 to vector<8x128xf32>
    %332 = arith.addf %330, %331 : vector<8x128xf32>
    %cst_169 = arith.constant 0.000000e+00 : f32
    %333 = vector.broadcast %cst_169 : f32 to vector<8x128xf32>
    %334 = arith.maximumf %332, %333 : vector<8x128xf32>
    %335 = vector.broadcast %328 : f32 to vector<8x128xf32>
    %336 = arith.mulf %335, %334 : vector<8x128xf32>
    %337 = arith.addf %325, %336 : vector<8x128xf32>
    %c0_170 = arith.constant 0 : index
    %c28 = arith.constant 28 : index
    %338 = memref.load %arg1[%c0_170, %c28] : memref<3x64xf32, #tpu.memory_space<smem>>
    %c1_171 = arith.constant 1 : index
    %c28_172 = arith.constant 28 : index
    %339 = memref.load %arg1[%c1_171, %c28_172] : memref<3x64xf32, #tpu.memory_space<smem>>
    %c2_173 = arith.constant 2 : index
    %c28_174 = arith.constant 28 : index
    %340 = memref.load %arg1[%c2_173, %c28_174] : memref<3x64xf32, #tpu.memory_space<smem>>
    %341 = vector.broadcast %338 : f32 to vector<8x128xf32>
    %342 = arith.mulf %0, %341 : vector<8x128xf32>
    %343 = vector.broadcast %339 : f32 to vector<8x128xf32>
    %344 = arith.addf %342, %343 : vector<8x128xf32>
    %cst_175 = arith.constant 0.000000e+00 : f32
    %345 = vector.broadcast %cst_175 : f32 to vector<8x128xf32>
    %346 = arith.maximumf %344, %345 : vector<8x128xf32>
    %347 = vector.broadcast %340 : f32 to vector<8x128xf32>
    %348 = arith.mulf %347, %346 : vector<8x128xf32>
    %349 = arith.addf %337, %348 : vector<8x128xf32>
    %c0_176 = arith.constant 0 : index
    %c29 = arith.constant 29 : index
    %350 = memref.load %arg1[%c0_176, %c29] : memref<3x64xf32, #tpu.memory_space<smem>>
    %c1_177 = arith.constant 1 : index
    %c29_178 = arith.constant 29 : index
    %351 = memref.load %arg1[%c1_177, %c29_178] : memref<3x64xf32, #tpu.memory_space<smem>>
    %c2_179 = arith.constant 2 : index
    %c29_180 = arith.constant 29 : index
    %352 = memref.load %arg1[%c2_179, %c29_180] : memref<3x64xf32, #tpu.memory_space<smem>>
    %353 = vector.broadcast %350 : f32 to vector<8x128xf32>
    %354 = arith.mulf %0, %353 : vector<8x128xf32>
    %355 = vector.broadcast %351 : f32 to vector<8x128xf32>
    %356 = arith.addf %354, %355 : vector<8x128xf32>
    %cst_181 = arith.constant 0.000000e+00 : f32
    %357 = vector.broadcast %cst_181 : f32 to vector<8x128xf32>
    %358 = arith.maximumf %356, %357 : vector<8x128xf32>
    %359 = vector.broadcast %352 : f32 to vector<8x128xf32>
    %360 = arith.mulf %359, %358 : vector<8x128xf32>
    %361 = arith.addf %349, %360 : vector<8x128xf32>
    %c0_182 = arith.constant 0 : index
    %c30 = arith.constant 30 : index
    %362 = memref.load %arg1[%c0_182, %c30] : memref<3x64xf32, #tpu.memory_space<smem>>
    %c1_183 = arith.constant 1 : index
    %c30_184 = arith.constant 30 : index
    %363 = memref.load %arg1[%c1_183, %c30_184] : memref<3x64xf32, #tpu.memory_space<smem>>
    %c2_185 = arith.constant 2 : index
    %c30_186 = arith.constant 30 : index
    %364 = memref.load %arg1[%c2_185, %c30_186] : memref<3x64xf32, #tpu.memory_space<smem>>
    %365 = vector.broadcast %362 : f32 to vector<8x128xf32>
    %366 = arith.mulf %0, %365 : vector<8x128xf32>
    %367 = vector.broadcast %363 : f32 to vector<8x128xf32>
    %368 = arith.addf %366, %367 : vector<8x128xf32>
    %cst_187 = arith.constant 0.000000e+00 : f32
    %369 = vector.broadcast %cst_187 : f32 to vector<8x128xf32>
    %370 = arith.maximumf %368, %369 : vector<8x128xf32>
    %371 = vector.broadcast %364 : f32 to vector<8x128xf32>
    %372 = arith.mulf %371, %370 : vector<8x128xf32>
    %373 = arith.addf %361, %372 : vector<8x128xf32>
    %c0_188 = arith.constant 0 : index
    %c31 = arith.constant 31 : index
    %374 = memref.load %arg1[%c0_188, %c31] : memref<3x64xf32, #tpu.memory_space<smem>>
    %c1_189 = arith.constant 1 : index
    %c31_190 = arith.constant 31 : index
    %375 = memref.load %arg1[%c1_189, %c31_190] : memref<3x64xf32, #tpu.memory_space<smem>>
    %c2_191 = arith.constant 2 : index
    %c31_192 = arith.constant 31 : index
    %376 = memref.load %arg1[%c2_191, %c31_192] : memref<3x64xf32, #tpu.memory_space<smem>>
    %377 = vector.broadcast %374 : f32 to vector<8x128xf32>
    %378 = arith.mulf %0, %377 : vector<8x128xf32>
    %379 = vector.broadcast %375 : f32 to vector<8x128xf32>
    %380 = arith.addf %378, %379 : vector<8x128xf32>
    %cst_193 = arith.constant 0.000000e+00 : f32
    %381 = vector.broadcast %cst_193 : f32 to vector<8x128xf32>
    %382 = arith.maximumf %380, %381 : vector<8x128xf32>
    %383 = vector.broadcast %376 : f32 to vector<8x128xf32>
    %384 = arith.mulf %383, %382 : vector<8x128xf32>
    %385 = arith.addf %373, %384 : vector<8x128xf32>
    %c0_194 = arith.constant 0 : index
    %c32 = arith.constant 32 : index
    %386 = memref.load %arg1[%c0_194, %c32] : memref<3x64xf32, #tpu.memory_space<smem>>
    %c1_195 = arith.constant 1 : index
    %c32_196 = arith.constant 32 : index
    %387 = memref.load %arg1[%c1_195, %c32_196] : memref<3x64xf32, #tpu.memory_space<smem>>
    %c2_197 = arith.constant 2 : index
    %c32_198 = arith.constant 32 : index
    %388 = memref.load %arg1[%c2_197, %c32_198] : memref<3x64xf32, #tpu.memory_space<smem>>
    %389 = vector.broadcast %386 : f32 to vector<8x128xf32>
    %390 = arith.mulf %0, %389 : vector<8x128xf32>
    %391 = vector.broadcast %387 : f32 to vector<8x128xf32>
    %392 = arith.addf %390, %391 : vector<8x128xf32>
    %cst_199 = arith.constant 0.000000e+00 : f32
    %393 = vector.broadcast %cst_199 : f32 to vector<8x128xf32>
    %394 = arith.maximumf %392, %393 : vector<8x128xf32>
    %395 = vector.broadcast %388 : f32 to vector<8x128xf32>
    %396 = arith.mulf %395, %394 : vector<8x128xf32>
    %397 = arith.addf %385, %396 : vector<8x128xf32>
    %c0_200 = arith.constant 0 : index
    %c33 = arith.constant 33 : index
    %398 = memref.load %arg1[%c0_200, %c33] : memref<3x64xf32, #tpu.memory_space<smem>>
    %c1_201 = arith.constant 1 : index
    %c33_202 = arith.constant 33 : index
    %399 = memref.load %arg1[%c1_201, %c33_202] : memref<3x64xf32, #tpu.memory_space<smem>>
    %c2_203 = arith.constant 2 : index
    %c33_204 = arith.constant 33 : index
    %400 = memref.load %arg1[%c2_203, %c33_204] : memref<3x64xf32, #tpu.memory_space<smem>>
    %401 = vector.broadcast %398 : f32 to vector<8x128xf32>
    %402 = arith.mulf %0, %401 : vector<8x128xf32>
    %403 = vector.broadcast %399 : f32 to vector<8x128xf32>
    %404 = arith.addf %402, %403 : vector<8x128xf32>
    %cst_205 = arith.constant 0.000000e+00 : f32
    %405 = vector.broadcast %cst_205 : f32 to vector<8x128xf32>
    %406 = arith.maximumf %404, %405 : vector<8x128xf32>
    %407 = vector.broadcast %400 : f32 to vector<8x128xf32>
    %408 = arith.mulf %407, %406 : vector<8x128xf32>
    %409 = arith.addf %397, %408 : vector<8x128xf32>
    %c0_206 = arith.constant 0 : index
    %c34 = arith.constant 34 : index
    %410 = memref.load %arg1[%c0_206, %c34] : memref<3x64xf32, #tpu.memory_space<smem>>
    %c1_207 = arith.constant 1 : index
    %c34_208 = arith.constant 34 : index
    %411 = memref.load %arg1[%c1_207, %c34_208] : memref<3x64xf32, #tpu.memory_space<smem>>
    %c2_209 = arith.constant 2 : index
    %c34_210 = arith.constant 34 : index
    %412 = memref.load %arg1[%c2_209, %c34_210] : memref<3x64xf32, #tpu.memory_space<smem>>
    %413 = vector.broadcast %410 : f32 to vector<8x128xf32>
    %414 = arith.mulf %0, %413 : vector<8x128xf32>
    %415 = vector.broadcast %411 : f32 to vector<8x128xf32>
    %416 = arith.addf %414, %415 : vector<8x128xf32>
    %cst_211 = arith.constant 0.000000e+00 : f32
    %417 = vector.broadcast %cst_211 : f32 to vector<8x128xf32>
    %418 = arith.maximumf %416, %417 : vector<8x128xf32>
    %419 = vector.broadcast %412 : f32 to vector<8x128xf32>
    %420 = arith.mulf %419, %418 : vector<8x128xf32>
    %421 = arith.addf %409, %420 : vector<8x128xf32>
    %c0_212 = arith.constant 0 : index
    %c35 = arith.constant 35 : index
    %422 = memref.load %arg1[%c0_212, %c35] : memref<3x64xf32, #tpu.memory_space<smem>>
    %c1_213 = arith.constant 1 : index
    %c35_214 = arith.constant 35 : index
    %423 = memref.load %arg1[%c1_213, %c35_214] : memref<3x64xf32, #tpu.memory_space<smem>>
    %c2_215 = arith.constant 2 : index
    %c35_216 = arith.constant 35 : index
    %424 = memref.load %arg1[%c2_215, %c35_216] : memref<3x64xf32, #tpu.memory_space<smem>>
    %425 = vector.broadcast %422 : f32 to vector<8x128xf32>
    %426 = arith.mulf %0, %425 : vector<8x128xf32>
    %427 = vector.broadcast %423 : f32 to vector<8x128xf32>
    %428 = arith.addf %426, %427 : vector<8x128xf32>
    %cst_217 = arith.constant 0.000000e+00 : f32
    %429 = vector.broadcast %cst_217 : f32 to vector<8x128xf32>
    %430 = arith.maximumf %428, %429 : vector<8x128xf32>
    %431 = vector.broadcast %424 : f32 to vector<8x128xf32>
    %432 = arith.mulf %431, %430 : vector<8x128xf32>
    %433 = arith.addf %421, %432 : vector<8x128xf32>
    %c0_218 = arith.constant 0 : index
    %c36 = arith.constant 36 : index
    %434 = memref.load %arg1[%c0_218, %c36] : memref<3x64xf32, #tpu.memory_space<smem>>
    %c1_219 = arith.constant 1 : index
    %c36_220 = arith.constant 36 : index
    %435 = memref.load %arg1[%c1_219, %c36_220] : memref<3x64xf32, #tpu.memory_space<smem>>
    %c2_221 = arith.constant 2 : index
    %c36_222 = arith.constant 36 : index
    %436 = memref.load %arg1[%c2_221, %c36_222] : memref<3x64xf32, #tpu.memory_space<smem>>
    %437 = vector.broadcast %434 : f32 to vector<8x128xf32>
    %438 = arith.mulf %0, %437 : vector<8x128xf32>
    %439 = vector.broadcast %435 : f32 to vector<8x128xf32>
    %440 = arith.addf %438, %439 : vector<8x128xf32>
    %cst_223 = arith.constant 0.000000e+00 : f32
    %441 = vector.broadcast %cst_223 : f32 to vector<8x128xf32>
    %442 = arith.maximumf %440, %441 : vector<8x128xf32>
    %443 = vector.broadcast %436 : f32 to vector<8x128xf32>
    %444 = arith.mulf %443, %442 : vector<8x128xf32>
    %445 = arith.addf %433, %444 : vector<8x128xf32>
    %c0_224 = arith.constant 0 : index
    %c37 = arith.constant 37 : index
    %446 = memref.load %arg1[%c0_224, %c37] : memref<3x64xf32, #tpu.memory_space<smem>>
    %c1_225 = arith.constant 1 : index
    %c37_226 = arith.constant 37 : index
    %447 = memref.load %arg1[%c1_225, %c37_226] : memref<3x64xf32, #tpu.memory_space<smem>>
    %c2_227 = arith.constant 2 : index
    %c37_228 = arith.constant 37 : index
    %448 = memref.load %arg1[%c2_227, %c37_228] : memref<3x64xf32, #tpu.memory_space<smem>>
    %449 = vector.broadcast %446 : f32 to vector<8x128xf32>
    %450 = arith.mulf %0, %449 : vector<8x128xf32>
    %451 = vector.broadcast %447 : f32 to vector<8x128xf32>
    %452 = arith.addf %450, %451 : vector<8x128xf32>
    %cst_229 = arith.constant 0.000000e+00 : f32
    %453 = vector.broadcast %cst_229 : f32 to vector<8x128xf32>
    %454 = arith.maximumf %452, %453 : vector<8x128xf32>
    %455 = vector.broadcast %448 : f32 to vector<8x128xf32>
    %456 = arith.mulf %455, %454 : vector<8x128xf32>
    %457 = arith.addf %445, %456 : vector<8x128xf32>
    %c0_230 = arith.constant 0 : index
    %c38 = arith.constant 38 : index
    %458 = memref.load %arg1[%c0_230, %c38] : memref<3x64xf32, #tpu.memory_space<smem>>
    %c1_231 = arith.constant 1 : index
    %c38_232 = arith.constant 38 : index
    %459 = memref.load %arg1[%c1_231, %c38_232] : memref<3x64xf32, #tpu.memory_space<smem>>
    %c2_233 = arith.constant 2 : index
    %c38_234 = arith.constant 38 : index
    %460 = memref.load %arg1[%c2_233, %c38_234] : memref<3x64xf32, #tpu.memory_space<smem>>
    %461 = vector.broadcast %458 : f32 to vector<8x128xf32>
    %462 = arith.mulf %0, %461 : vector<8x128xf32>
    %463 = vector.broadcast %459 : f32 to vector<8x128xf32>
    %464 = arith.addf %462, %463 : vector<8x128xf32>
    %cst_235 = arith.constant 0.000000e+00 : f32
    %465 = vector.broadcast %cst_235 : f32 to vector<8x128xf32>
    %466 = arith.maximumf %464, %465 : vector<8x128xf32>
    %467 = vector.broadcast %460 : f32 to vector<8x128xf32>
    %468 = arith.mulf %467, %466 : vector<8x128xf32>
    %469 = arith.addf %457, %468 : vector<8x128xf32>
    %c0_236 = arith.constant 0 : index
    %c39 = arith.constant 39 : index
    %470 = memref.load %arg1[%c0_236, %c39] : memref<3x64xf32, #tpu.memory_space<smem>>
    %c1_237 = arith.constant 1 : index
    %c39_238 = arith.constant 39 : index
    %471 = memref.load %arg1[%c1_237, %c39_238] : memref<3x64xf32, #tpu.memory_space<smem>>
    %c2_239 = arith.constant 2 : index
    %c39_240 = arith.constant 39 : index
    %472 = memref.load %arg1[%c2_239, %c39_240] : memref<3x64xf32, #tpu.memory_space<smem>>
    %473 = vector.broadcast %470 : f32 to vector<8x128xf32>
    %474 = arith.mulf %0, %473 : vector<8x128xf32>
    %475 = vector.broadcast %471 : f32 to vector<8x128xf32>
    %476 = arith.addf %474, %475 : vector<8x128xf32>
    %cst_241 = arith.constant 0.000000e+00 : f32
    %477 = vector.broadcast %cst_241 : f32 to vector<8x128xf32>
    %478 = arith.maximumf %476, %477 : vector<8x128xf32>
    %479 = vector.broadcast %472 : f32 to vector<8x128xf32>
    %480 = arith.mulf %479, %478 : vector<8x128xf32>
    %481 = arith.addf %469, %480 : vector<8x128xf32>
    %c0_242 = arith.constant 0 : index
    %c40 = arith.constant 40 : index
    %482 = memref.load %arg1[%c0_242, %c40] : memref<3x64xf32, #tpu.memory_space<smem>>
    %c1_243 = arith.constant 1 : index
    %c40_244 = arith.constant 40 : index
    %483 = memref.load %arg1[%c1_243, %c40_244] : memref<3x64xf32, #tpu.memory_space<smem>>
    %c2_245 = arith.constant 2 : index
    %c40_246 = arith.constant 40 : index
    %484 = memref.load %arg1[%c2_245, %c40_246] : memref<3x64xf32, #tpu.memory_space<smem>>
    %485 = vector.broadcast %482 : f32 to vector<8x128xf32>
    %486 = arith.mulf %0, %485 : vector<8x128xf32>
    %487 = vector.broadcast %483 : f32 to vector<8x128xf32>
    %488 = arith.addf %486, %487 : vector<8x128xf32>
    %cst_247 = arith.constant 0.000000e+00 : f32
    %489 = vector.broadcast %cst_247 : f32 to vector<8x128xf32>
    %490 = arith.maximumf %488, %489 : vector<8x128xf32>
    %491 = vector.broadcast %484 : f32 to vector<8x128xf32>
    %492 = arith.mulf %491, %490 : vector<8x128xf32>
    %493 = arith.addf %481, %492 : vector<8x128xf32>
    %c0_248 = arith.constant 0 : index
    %c41 = arith.constant 41 : index
    %494 = memref.load %arg1[%c0_248, %c41] : memref<3x64xf32, #tpu.memory_space<smem>>
    %c1_249 = arith.constant 1 : index
    %c41_250 = arith.constant 41 : index
    %495 = memref.load %arg1[%c1_249, %c41_250] : memref<3x64xf32, #tpu.memory_space<smem>>
    %c2_251 = arith.constant 2 : index
    %c41_252 = arith.constant 41 : index
    %496 = memref.load %arg1[%c2_251, %c41_252] : memref<3x64xf32, #tpu.memory_space<smem>>
    %497 = vector.broadcast %494 : f32 to vector<8x128xf32>
    %498 = arith.mulf %0, %497 : vector<8x128xf32>
    %499 = vector.broadcast %495 : f32 to vector<8x128xf32>
    %500 = arith.addf %498, %499 : vector<8x128xf32>
    %cst_253 = arith.constant 0.000000e+00 : f32
    %501 = vector.broadcast %cst_253 : f32 to vector<8x128xf32>
    %502 = arith.maximumf %500, %501 : vector<8x128xf32>
    %503 = vector.broadcast %496 : f32 to vector<8x128xf32>
    %504 = arith.mulf %503, %502 : vector<8x128xf32>
    %505 = arith.addf %493, %504 : vector<8x128xf32>
    %c0_254 = arith.constant 0 : index
    %c42 = arith.constant 42 : index
    %506 = memref.load %arg1[%c0_254, %c42] : memref<3x64xf32, #tpu.memory_space<smem>>
    %c1_255 = arith.constant 1 : index
    %c42_256 = arith.constant 42 : index
    %507 = memref.load %arg1[%c1_255, %c42_256] : memref<3x64xf32, #tpu.memory_space<smem>>
    %c2_257 = arith.constant 2 : index
    %c42_258 = arith.constant 42 : index
    %508 = memref.load %arg1[%c2_257, %c42_258] : memref<3x64xf32, #tpu.memory_space<smem>>
    %509 = vector.broadcast %506 : f32 to vector<8x128xf32>
    %510 = arith.mulf %0, %509 : vector<8x128xf32>
    %511 = vector.broadcast %507 : f32 to vector<8x128xf32>
    %512 = arith.addf %510, %511 : vector<8x128xf32>
    %cst_259 = arith.constant 0.000000e+00 : f32
    %513 = vector.broadcast %cst_259 : f32 to vector<8x128xf32>
    %514 = arith.maximumf %512, %513 : vector<8x128xf32>
    %515 = vector.broadcast %508 : f32 to vector<8x128xf32>
    %516 = arith.mulf %515, %514 : vector<8x128xf32>
    %517 = arith.addf %505, %516 : vector<8x128xf32>
    %c0_260 = arith.constant 0 : index
    %c43 = arith.constant 43 : index
    %518 = memref.load %arg1[%c0_260, %c43] : memref<3x64xf32, #tpu.memory_space<smem>>
    %c1_261 = arith.constant 1 : index
    %c43_262 = arith.constant 43 : index
    %519 = memref.load %arg1[%c1_261, %c43_262] : memref<3x64xf32, #tpu.memory_space<smem>>
    %c2_263 = arith.constant 2 : index
    %c43_264 = arith.constant 43 : index
    %520 = memref.load %arg1[%c2_263, %c43_264] : memref<3x64xf32, #tpu.memory_space<smem>>
    %521 = vector.broadcast %518 : f32 to vector<8x128xf32>
    %522 = arith.mulf %0, %521 : vector<8x128xf32>
    %523 = vector.broadcast %519 : f32 to vector<8x128xf32>
    %524 = arith.addf %522, %523 : vector<8x128xf32>
    %cst_265 = arith.constant 0.000000e+00 : f32
    %525 = vector.broadcast %cst_265 : f32 to vector<8x128xf32>
    %526 = arith.maximumf %524, %525 : vector<8x128xf32>
    %527 = vector.broadcast %520 : f32 to vector<8x128xf32>
    %528 = arith.mulf %527, %526 : vector<8x128xf32>
    %529 = arith.addf %517, %528 : vector<8x128xf32>
    %c0_266 = arith.constant 0 : index
    %c44 = arith.constant 44 : index
    %530 = memref.load %arg1[%c0_266, %c44] : memref<3x64xf32, #tpu.memory_space<smem>>
    %c1_267 = arith.constant 1 : index
    %c44_268 = arith.constant 44 : index
    %531 = memref.load %arg1[%c1_267, %c44_268] : memref<3x64xf32, #tpu.memory_space<smem>>
    %c2_269 = arith.constant 2 : index
    %c44_270 = arith.constant 44 : index
    %532 = memref.load %arg1[%c2_269, %c44_270] : memref<3x64xf32, #tpu.memory_space<smem>>
    %533 = vector.broadcast %530 : f32 to vector<8x128xf32>
    %534 = arith.mulf %0, %533 : vector<8x128xf32>
    %535 = vector.broadcast %531 : f32 to vector<8x128xf32>
    %536 = arith.addf %534, %535 : vector<8x128xf32>
    %cst_271 = arith.constant 0.000000e+00 : f32
    %537 = vector.broadcast %cst_271 : f32 to vector<8x128xf32>
    %538 = arith.maximumf %536, %537 : vector<8x128xf32>
    %539 = vector.broadcast %532 : f32 to vector<8x128xf32>
    %540 = arith.mulf %539, %538 : vector<8x128xf32>
    %541 = arith.addf %529, %540 : vector<8x128xf32>
    %c0_272 = arith.constant 0 : index
    %c45 = arith.constant 45 : index
    %542 = memref.load %arg1[%c0_272, %c45] : memref<3x64xf32, #tpu.memory_space<smem>>
    %c1_273 = arith.constant 1 : index
    %c45_274 = arith.constant 45 : index
    %543 = memref.load %arg1[%c1_273, %c45_274] : memref<3x64xf32, #tpu.memory_space<smem>>
    %c2_275 = arith.constant 2 : index
    %c45_276 = arith.constant 45 : index
    %544 = memref.load %arg1[%c2_275, %c45_276] : memref<3x64xf32, #tpu.memory_space<smem>>
    %545 = vector.broadcast %542 : f32 to vector<8x128xf32>
    %546 = arith.mulf %0, %545 : vector<8x128xf32>
    %547 = vector.broadcast %543 : f32 to vector<8x128xf32>
    %548 = arith.addf %546, %547 : vector<8x128xf32>
    %cst_277 = arith.constant 0.000000e+00 : f32
    %549 = vector.broadcast %cst_277 : f32 to vector<8x128xf32>
    %550 = arith.maximumf %548, %549 : vector<8x128xf32>
    %551 = vector.broadcast %544 : f32 to vector<8x128xf32>
    %552 = arith.mulf %551, %550 : vector<8x128xf32>
    %553 = arith.addf %541, %552 : vector<8x128xf32>
    %c0_278 = arith.constant 0 : index
    %c46 = arith.constant 46 : index
    %554 = memref.load %arg1[%c0_278, %c46] : memref<3x64xf32, #tpu.memory_space<smem>>
    %c1_279 = arith.constant 1 : index
    %c46_280 = arith.constant 46 : index
    %555 = memref.load %arg1[%c1_279, %c46_280] : memref<3x64xf32, #tpu.memory_space<smem>>
    %c2_281 = arith.constant 2 : index
    %c46_282 = arith.constant 46 : index
    %556 = memref.load %arg1[%c2_281, %c46_282] : memref<3x64xf32, #tpu.memory_space<smem>>
    %557 = vector.broadcast %554 : f32 to vector<8x128xf32>
    %558 = arith.mulf %0, %557 : vector<8x128xf32>
    %559 = vector.broadcast %555 : f32 to vector<8x128xf32>
    %560 = arith.addf %558, %559 : vector<8x128xf32>
    %cst_283 = arith.constant 0.000000e+00 : f32
    %561 = vector.broadcast %cst_283 : f32 to vector<8x128xf32>
    %562 = arith.maximumf %560, %561 : vector<8x128xf32>
    %563 = vector.broadcast %556 : f32 to vector<8x128xf32>
    %564 = arith.mulf %563, %562 : vector<8x128xf32>
    %565 = arith.addf %553, %564 : vector<8x128xf32>
    %c0_284 = arith.constant 0 : index
    %c47 = arith.constant 47 : index
    %566 = memref.load %arg1[%c0_284, %c47] : memref<3x64xf32, #tpu.memory_space<smem>>
    %c1_285 = arith.constant 1 : index
    %c47_286 = arith.constant 47 : index
    %567 = memref.load %arg1[%c1_285, %c47_286] : memref<3x64xf32, #tpu.memory_space<smem>>
    %c2_287 = arith.constant 2 : index
    %c47_288 = arith.constant 47 : index
    %568 = memref.load %arg1[%c2_287, %c47_288] : memref<3x64xf32, #tpu.memory_space<smem>>
    %569 = vector.broadcast %566 : f32 to vector<8x128xf32>
    %570 = arith.mulf %0, %569 : vector<8x128xf32>
    %571 = vector.broadcast %567 : f32 to vector<8x128xf32>
    %572 = arith.addf %570, %571 : vector<8x128xf32>
    %cst_289 = arith.constant 0.000000e+00 : f32
    %573 = vector.broadcast %cst_289 : f32 to vector<8x128xf32>
    %574 = arith.maximumf %572, %573 : vector<8x128xf32>
    %575 = vector.broadcast %568 : f32 to vector<8x128xf32>
    %576 = arith.mulf %575, %574 : vector<8x128xf32>
    %577 = arith.addf %565, %576 : vector<8x128xf32>
    %c0_290 = arith.constant 0 : index
    %c48 = arith.constant 48 : index
    %578 = memref.load %arg1[%c0_290, %c48] : memref<3x64xf32, #tpu.memory_space<smem>>
    %c1_291 = arith.constant 1 : index
    %c48_292 = arith.constant 48 : index
    %579 = memref.load %arg1[%c1_291, %c48_292] : memref<3x64xf32, #tpu.memory_space<smem>>
    %c2_293 = arith.constant 2 : index
    %c48_294 = arith.constant 48 : index
    %580 = memref.load %arg1[%c2_293, %c48_294] : memref<3x64xf32, #tpu.memory_space<smem>>
    %581 = vector.broadcast %578 : f32 to vector<8x128xf32>
    %582 = arith.mulf %0, %581 : vector<8x128xf32>
    %583 = vector.broadcast %579 : f32 to vector<8x128xf32>
    %584 = arith.addf %582, %583 : vector<8x128xf32>
    %cst_295 = arith.constant 0.000000e+00 : f32
    %585 = vector.broadcast %cst_295 : f32 to vector<8x128xf32>
    %586 = arith.maximumf %584, %585 : vector<8x128xf32>
    %587 = vector.broadcast %580 : f32 to vector<8x128xf32>
    %588 = arith.mulf %587, %586 : vector<8x128xf32>
    %589 = arith.addf %577, %588 : vector<8x128xf32>
    %c0_296 = arith.constant 0 : index
    %c49 = arith.constant 49 : index
    %590 = memref.load %arg1[%c0_296, %c49] : memref<3x64xf32, #tpu.memory_space<smem>>
    %c1_297 = arith.constant 1 : index
    %c49_298 = arith.constant 49 : index
    %591 = memref.load %arg1[%c1_297, %c49_298] : memref<3x64xf32, #tpu.memory_space<smem>>
    %c2_299 = arith.constant 2 : index
    %c49_300 = arith.constant 49 : index
    %592 = memref.load %arg1[%c2_299, %c49_300] : memref<3x64xf32, #tpu.memory_space<smem>>
    %593 = vector.broadcast %590 : f32 to vector<8x128xf32>
    %594 = arith.mulf %0, %593 : vector<8x128xf32>
    %595 = vector.broadcast %591 : f32 to vector<8x128xf32>
    %596 = arith.addf %594, %595 : vector<8x128xf32>
    %cst_301 = arith.constant 0.000000e+00 : f32
    %597 = vector.broadcast %cst_301 : f32 to vector<8x128xf32>
    %598 = arith.maximumf %596, %597 : vector<8x128xf32>
    %599 = vector.broadcast %592 : f32 to vector<8x128xf32>
    %600 = arith.mulf %599, %598 : vector<8x128xf32>
    %601 = arith.addf %589, %600 : vector<8x128xf32>
    %c0_302 = arith.constant 0 : index
    %c50 = arith.constant 50 : index
    %602 = memref.load %arg1[%c0_302, %c50] : memref<3x64xf32, #tpu.memory_space<smem>>
    %c1_303 = arith.constant 1 : index
    %c50_304 = arith.constant 50 : index
    %603 = memref.load %arg1[%c1_303, %c50_304] : memref<3x64xf32, #tpu.memory_space<smem>>
    %c2_305 = arith.constant 2 : index
    %c50_306 = arith.constant 50 : index
    %604 = memref.load %arg1[%c2_305, %c50_306] : memref<3x64xf32, #tpu.memory_space<smem>>
    %605 = vector.broadcast %602 : f32 to vector<8x128xf32>
    %606 = arith.mulf %0, %605 : vector<8x128xf32>
    %607 = vector.broadcast %603 : f32 to vector<8x128xf32>
    %608 = arith.addf %606, %607 : vector<8x128xf32>
    %cst_307 = arith.constant 0.000000e+00 : f32
    %609 = vector.broadcast %cst_307 : f32 to vector<8x128xf32>
    %610 = arith.maximumf %608, %609 : vector<8x128xf32>
    %611 = vector.broadcast %604 : f32 to vector<8x128xf32>
    %612 = arith.mulf %611, %610 : vector<8x128xf32>
    %613 = arith.addf %601, %612 : vector<8x128xf32>
    %c0_308 = arith.constant 0 : index
    %c51 = arith.constant 51 : index
    %614 = memref.load %arg1[%c0_308, %c51] : memref<3x64xf32, #tpu.memory_space<smem>>
    %c1_309 = arith.constant 1 : index
    %c51_310 = arith.constant 51 : index
    %615 = memref.load %arg1[%c1_309, %c51_310] : memref<3x64xf32, #tpu.memory_space<smem>>
    %c2_311 = arith.constant 2 : index
    %c51_312 = arith.constant 51 : index
    %616 = memref.load %arg1[%c2_311, %c51_312] : memref<3x64xf32, #tpu.memory_space<smem>>
    %617 = vector.broadcast %614 : f32 to vector<8x128xf32>
    %618 = arith.mulf %0, %617 : vector<8x128xf32>
    %619 = vector.broadcast %615 : f32 to vector<8x128xf32>
    %620 = arith.addf %618, %619 : vector<8x128xf32>
    %cst_313 = arith.constant 0.000000e+00 : f32
    %621 = vector.broadcast %cst_313 : f32 to vector<8x128xf32>
    %622 = arith.maximumf %620, %621 : vector<8x128xf32>
    %623 = vector.broadcast %616 : f32 to vector<8x128xf32>
    %624 = arith.mulf %623, %622 : vector<8x128xf32>
    %625 = arith.addf %613, %624 : vector<8x128xf32>
    %c0_314 = arith.constant 0 : index
    %c52 = arith.constant 52 : index
    %626 = memref.load %arg1[%c0_314, %c52] : memref<3x64xf32, #tpu.memory_space<smem>>
    %c1_315 = arith.constant 1 : index
    %c52_316 = arith.constant 52 : index
    %627 = memref.load %arg1[%c1_315, %c52_316] : memref<3x64xf32, #tpu.memory_space<smem>>
    %c2_317 = arith.constant 2 : index
    %c52_318 = arith.constant 52 : index
    %628 = memref.load %arg1[%c2_317, %c52_318] : memref<3x64xf32, #tpu.memory_space<smem>>
    %629 = vector.broadcast %626 : f32 to vector<8x128xf32>
    %630 = arith.mulf %0, %629 : vector<8x128xf32>
    %631 = vector.broadcast %627 : f32 to vector<8x128xf32>
    %632 = arith.addf %630, %631 : vector<8x128xf32>
    %cst_319 = arith.constant 0.000000e+00 : f32
    %633 = vector.broadcast %cst_319 : f32 to vector<8x128xf32>
    %634 = arith.maximumf %632, %633 : vector<8x128xf32>
    %635 = vector.broadcast %628 : f32 to vector<8x128xf32>
    %636 = arith.mulf %635, %634 : vector<8x128xf32>
    %637 = arith.addf %625, %636 : vector<8x128xf32>
    %c0_320 = arith.constant 0 : index
    %c53 = arith.constant 53 : index
    %638 = memref.load %arg1[%c0_320, %c53] : memref<3x64xf32, #tpu.memory_space<smem>>
    %c1_321 = arith.constant 1 : index
    %c53_322 = arith.constant 53 : index
    %639 = memref.load %arg1[%c1_321, %c53_322] : memref<3x64xf32, #tpu.memory_space<smem>>
    %c2_323 = arith.constant 2 : index
    %c53_324 = arith.constant 53 : index
    %640 = memref.load %arg1[%c2_323, %c53_324] : memref<3x64xf32, #tpu.memory_space<smem>>
    %641 = vector.broadcast %638 : f32 to vector<8x128xf32>
    %642 = arith.mulf %0, %641 : vector<8x128xf32>
    %643 = vector.broadcast %639 : f32 to vector<8x128xf32>
    %644 = arith.addf %642, %643 : vector<8x128xf32>
    %cst_325 = arith.constant 0.000000e+00 : f32
    %645 = vector.broadcast %cst_325 : f32 to vector<8x128xf32>
    %646 = arith.maximumf %644, %645 : vector<8x128xf32>
    %647 = vector.broadcast %640 : f32 to vector<8x128xf32>
    %648 = arith.mulf %647, %646 : vector<8x128xf32>
    %649 = arith.addf %637, %648 : vector<8x128xf32>
    %c0_326 = arith.constant 0 : index
    %c54 = arith.constant 54 : index
    %650 = memref.load %arg1[%c0_326, %c54] : memref<3x64xf32, #tpu.memory_space<smem>>
    %c1_327 = arith.constant 1 : index
    %c54_328 = arith.constant 54 : index
    %651 = memref.load %arg1[%c1_327, %c54_328] : memref<3x64xf32, #tpu.memory_space<smem>>
    %c2_329 = arith.constant 2 : index
    %c54_330 = arith.constant 54 : index
    %652 = memref.load %arg1[%c2_329, %c54_330] : memref<3x64xf32, #tpu.memory_space<smem>>
    %653 = vector.broadcast %650 : f32 to vector<8x128xf32>
    %654 = arith.mulf %0, %653 : vector<8x128xf32>
    %655 = vector.broadcast %651 : f32 to vector<8x128xf32>
    %656 = arith.addf %654, %655 : vector<8x128xf32>
    %cst_331 = arith.constant 0.000000e+00 : f32
    %657 = vector.broadcast %cst_331 : f32 to vector<8x128xf32>
    %658 = arith.maximumf %656, %657 : vector<8x128xf32>
    %659 = vector.broadcast %652 : f32 to vector<8x128xf32>
    %660 = arith.mulf %659, %658 : vector<8x128xf32>
    %661 = arith.addf %649, %660 : vector<8x128xf32>
    %c0_332 = arith.constant 0 : index
    %c55 = arith.constant 55 : index
    %662 = memref.load %arg1[%c0_332, %c55] : memref<3x64xf32, #tpu.memory_space<smem>>
    %c1_333 = arith.constant 1 : index
    %c55_334 = arith.constant 55 : index
    %663 = memref.load %arg1[%c1_333, %c55_334] : memref<3x64xf32, #tpu.memory_space<smem>>
    %c2_335 = arith.constant 2 : index
    %c55_336 = arith.constant 55 : index
    %664 = memref.load %arg1[%c2_335, %c55_336] : memref<3x64xf32, #tpu.memory_space<smem>>
    %665 = vector.broadcast %662 : f32 to vector<8x128xf32>
    %666 = arith.mulf %0, %665 : vector<8x128xf32>
    %667 = vector.broadcast %663 : f32 to vector<8x128xf32>
    %668 = arith.addf %666, %667 : vector<8x128xf32>
    %cst_337 = arith.constant 0.000000e+00 : f32
    %669 = vector.broadcast %cst_337 : f32 to vector<8x128xf32>
    %670 = arith.maximumf %668, %669 : vector<8x128xf32>
    %671 = vector.broadcast %664 : f32 to vector<8x128xf32>
    %672 = arith.mulf %671, %670 : vector<8x128xf32>
    %673 = arith.addf %661, %672 : vector<8x128xf32>
    %c0_338 = arith.constant 0 : index
    %c56 = arith.constant 56 : index
    %674 = memref.load %arg1[%c0_338, %c56] : memref<3x64xf32, #tpu.memory_space<smem>>
    %c1_339 = arith.constant 1 : index
    %c56_340 = arith.constant 56 : index
    %675 = memref.load %arg1[%c1_339, %c56_340] : memref<3x64xf32, #tpu.memory_space<smem>>
    %c2_341 = arith.constant 2 : index
    %c56_342 = arith.constant 56 : index
    %676 = memref.load %arg1[%c2_341, %c56_342] : memref<3x64xf32, #tpu.memory_space<smem>>
    %677 = vector.broadcast %674 : f32 to vector<8x128xf32>
    %678 = arith.mulf %0, %677 : vector<8x128xf32>
    %679 = vector.broadcast %675 : f32 to vector<8x128xf32>
    %680 = arith.addf %678, %679 : vector<8x128xf32>
    %cst_343 = arith.constant 0.000000e+00 : f32
    %681 = vector.broadcast %cst_343 : f32 to vector<8x128xf32>
    %682 = arith.maximumf %680, %681 : vector<8x128xf32>
    %683 = vector.broadcast %676 : f32 to vector<8x128xf32>
    %684 = arith.mulf %683, %682 : vector<8x128xf32>
    %685 = arith.addf %673, %684 : vector<8x128xf32>
    %c0_344 = arith.constant 0 : index
    %c57 = arith.constant 57 : index
    %686 = memref.load %arg1[%c0_344, %c57] : memref<3x64xf32, #tpu.memory_space<smem>>
    %c1_345 = arith.constant 1 : index
    %c57_346 = arith.constant 57 : index
    %687 = memref.load %arg1[%c1_345, %c57_346] : memref<3x64xf32, #tpu.memory_space<smem>>
    %c2_347 = arith.constant 2 : index
    %c57_348 = arith.constant 57 : index
    %688 = memref.load %arg1[%c2_347, %c57_348] : memref<3x64xf32, #tpu.memory_space<smem>>
    %689 = vector.broadcast %686 : f32 to vector<8x128xf32>
    %690 = arith.mulf %0, %689 : vector<8x128xf32>
    %691 = vector.broadcast %687 : f32 to vector<8x128xf32>
    %692 = arith.addf %690, %691 : vector<8x128xf32>
    %cst_349 = arith.constant 0.000000e+00 : f32
    %693 = vector.broadcast %cst_349 : f32 to vector<8x128xf32>
    %694 = arith.maximumf %692, %693 : vector<8x128xf32>
    %695 = vector.broadcast %688 : f32 to vector<8x128xf32>
    %696 = arith.mulf %695, %694 : vector<8x128xf32>
    %697 = arith.addf %685, %696 : vector<8x128xf32>
    %c0_350 = arith.constant 0 : index
    %c58 = arith.constant 58 : index
    %698 = memref.load %arg1[%c0_350, %c58] : memref<3x64xf32, #tpu.memory_space<smem>>
    %c1_351 = arith.constant 1 : index
    %c58_352 = arith.constant 58 : index
    %699 = memref.load %arg1[%c1_351, %c58_352] : memref<3x64xf32, #tpu.memory_space<smem>>
    %c2_353 = arith.constant 2 : index
    %c58_354 = arith.constant 58 : index
    %700 = memref.load %arg1[%c2_353, %c58_354] : memref<3x64xf32, #tpu.memory_space<smem>>
    %701 = vector.broadcast %698 : f32 to vector<8x128xf32>
    %702 = arith.mulf %0, %701 : vector<8x128xf32>
    %703 = vector.broadcast %699 : f32 to vector<8x128xf32>
    %704 = arith.addf %702, %703 : vector<8x128xf32>
    %cst_355 = arith.constant 0.000000e+00 : f32
    %705 = vector.broadcast %cst_355 : f32 to vector<8x128xf32>
    %706 = arith.maximumf %704, %705 : vector<8x128xf32>
    %707 = vector.broadcast %700 : f32 to vector<8x128xf32>
    %708 = arith.mulf %707, %706 : vector<8x128xf32>
    %709 = arith.addf %697, %708 : vector<8x128xf32>
    %c0_356 = arith.constant 0 : index
    %c59 = arith.constant 59 : index
    %710 = memref.load %arg1[%c0_356, %c59] : memref<3x64xf32, #tpu.memory_space<smem>>
    %c1_357 = arith.constant 1 : index
    %c59_358 = arith.constant 59 : index
    %711 = memref.load %arg1[%c1_357, %c59_358] : memref<3x64xf32, #tpu.memory_space<smem>>
    %c2_359 = arith.constant 2 : index
    %c59_360 = arith.constant 59 : index
    %712 = memref.load %arg1[%c2_359, %c59_360] : memref<3x64xf32, #tpu.memory_space<smem>>
    %713 = vector.broadcast %710 : f32 to vector<8x128xf32>
    %714 = arith.mulf %0, %713 : vector<8x128xf32>
    %715 = vector.broadcast %711 : f32 to vector<8x128xf32>
    %716 = arith.addf %714, %715 : vector<8x128xf32>
    %cst_361 = arith.constant 0.000000e+00 : f32
    %717 = vector.broadcast %cst_361 : f32 to vector<8x128xf32>
    %718 = arith.maximumf %716, %717 : vector<8x128xf32>
    %719 = vector.broadcast %712 : f32 to vector<8x128xf32>
    %720 = arith.mulf %719, %718 : vector<8x128xf32>
    %721 = arith.addf %709, %720 : vector<8x128xf32>
    %c0_362 = arith.constant 0 : index
    %c60 = arith.constant 60 : index
    %722 = memref.load %arg1[%c0_362, %c60] : memref<3x64xf32, #tpu.memory_space<smem>>
    %c1_363 = arith.constant 1 : index
    %c60_364 = arith.constant 60 : index
    %723 = memref.load %arg1[%c1_363, %c60_364] : memref<3x64xf32, #tpu.memory_space<smem>>
    %c2_365 = arith.constant 2 : index
    %c60_366 = arith.constant 60 : index
    %724 = memref.load %arg1[%c2_365, %c60_366] : memref<3x64xf32, #tpu.memory_space<smem>>
    %725 = vector.broadcast %722 : f32 to vector<8x128xf32>
    %726 = arith.mulf %0, %725 : vector<8x128xf32>
    %727 = vector.broadcast %723 : f32 to vector<8x128xf32>
    %728 = arith.addf %726, %727 : vector<8x128xf32>
    %cst_367 = arith.constant 0.000000e+00 : f32
    %729 = vector.broadcast %cst_367 : f32 to vector<8x128xf32>
    %730 = arith.maximumf %728, %729 : vector<8x128xf32>
    %731 = vector.broadcast %724 : f32 to vector<8x128xf32>
    %732 = arith.mulf %731, %730 : vector<8x128xf32>
    %733 = arith.addf %721, %732 : vector<8x128xf32>
    %c0_368 = arith.constant 0 : index
    %c61 = arith.constant 61 : index
    %734 = memref.load %arg1[%c0_368, %c61] : memref<3x64xf32, #tpu.memory_space<smem>>
    %c1_369 = arith.constant 1 : index
    %c61_370 = arith.constant 61 : index
    %735 = memref.load %arg1[%c1_369, %c61_370] : memref<3x64xf32, #tpu.memory_space<smem>>
    %c2_371 = arith.constant 2 : index
    %c61_372 = arith.constant 61 : index
    %736 = memref.load %arg1[%c2_371, %c61_372] : memref<3x64xf32, #tpu.memory_space<smem>>
    %737 = vector.broadcast %734 : f32 to vector<8x128xf32>
    %738 = arith.mulf %0, %737 : vector<8x128xf32>
    %739 = vector.broadcast %735 : f32 to vector<8x128xf32>
    %740 = arith.addf %738, %739 : vector<8x128xf32>
    %cst_373 = arith.constant 0.000000e+00 : f32
    %741 = vector.broadcast %cst_373 : f32 to vector<8x128xf32>
    %742 = arith.maximumf %740, %741 : vector<8x128xf32>
    %743 = vector.broadcast %736 : f32 to vector<8x128xf32>
    %744 = arith.mulf %743, %742 : vector<8x128xf32>
    %745 = arith.addf %733, %744 : vector<8x128xf32>
    %c0_374 = arith.constant 0 : index
    %c62 = arith.constant 62 : index
    %746 = memref.load %arg1[%c0_374, %c62] : memref<3x64xf32, #tpu.memory_space<smem>>
    %c1_375 = arith.constant 1 : index
    %c62_376 = arith.constant 62 : index
    %747 = memref.load %arg1[%c1_375, %c62_376] : memref<3x64xf32, #tpu.memory_space<smem>>
    %c2_377 = arith.constant 2 : index
    %c62_378 = arith.constant 62 : index
    %748 = memref.load %arg1[%c2_377, %c62_378] : memref<3x64xf32, #tpu.memory_space<smem>>
    %749 = vector.broadcast %746 : f32 to vector<8x128xf32>
    %750 = arith.mulf %0, %749 : vector<8x128xf32>
    %751 = vector.broadcast %747 : f32 to vector<8x128xf32>
    %752 = arith.addf %750, %751 : vector<8x128xf32>
    %cst_379 = arith.constant 0.000000e+00 : f32
    %753 = vector.broadcast %cst_379 : f32 to vector<8x128xf32>
    %754 = arith.maximumf %752, %753 : vector<8x128xf32>
    %755 = vector.broadcast %748 : f32 to vector<8x128xf32>
    %756 = arith.mulf %755, %754 : vector<8x128xf32>
    %757 = arith.addf %745, %756 : vector<8x128xf32>
    %c0_380 = arith.constant 0 : index
    %c63 = arith.constant 63 : index
    %758 = memref.load %arg1[%c0_380, %c63] : memref<3x64xf32, #tpu.memory_space<smem>>
    %c1_381 = arith.constant 1 : index
    %c63_382 = arith.constant 63 : index
    %759 = memref.load %arg1[%c1_381, %c63_382] : memref<3x64xf32, #tpu.memory_space<smem>>
    %c2_383 = arith.constant 2 : index
    %c63_384 = arith.constant 63 : index
    %760 = memref.load %arg1[%c2_383, %c63_384] : memref<3x64xf32, #tpu.memory_space<smem>>
    %761 = vector.broadcast %758 : f32 to vector<8x128xf32>
    %762 = arith.mulf %0, %761 : vector<8x128xf32>
    %763 = vector.broadcast %759 : f32 to vector<8x128xf32>
    %764 = arith.addf %762, %763 : vector<8x128xf32>
    %cst_385 = arith.constant 0.000000e+00 : f32
    %765 = vector.broadcast %cst_385 : f32 to vector<8x128xf32>
    %766 = arith.maximumf %764, %765 : vector<8x128xf32>
    %767 = vector.broadcast %760 : f32 to vector<8x128xf32>
    %768 = arith.mulf %767, %766 : vector<8x128xf32>
    %769 = arith.addf %757, %768 : vector<8x128xf32>
    %c0_386 = arith.constant 0 : index
    %c0_387 = arith.constant 0 : index
    %770 = vector.load %arg3[%c0_386, %c0_387] : memref<8x128xf32, #tpu.memory_space<vmem>>, vector<8x128xf32>
    tpu.vector_store %arg3[%c0_386, %c0_387], %769 {strides = array<i32>} : memref<8x128xf32, #tpu.memory_space<vmem>>, vector<8x128xf32>,
    return
  }
  func.func @transform_0(%arg0: i32) -> (i32, i32) {
    %c0_i32 = arith.constant 0 : i32
    %c0_i32_0 = arith.constant 0 : i32
    %c0_i32_1 = arith.constant 0 : i32
    return %c0_i32, %c0_i32_0 : i32, i32
  }
  func.func @transform_1(%arg0: i32) -> (i32, i32) {
    %c0_i32 = arith.constant 0 : i32
    %c0_i32_0 = arith.constant 0 : i32
    return %arg0, %c0_i32 : i32, i32
  }
  func.func @transform_2(%arg0: i32) -> (i32, i32) {
    %c0_i32 = arith.constant 0 : i32
    %c0_i32_0 = arith.constant 0 : i32
    return %arg0, %c0_i32 : i32, i32
  }
}

</mosaic_0001>

<bundles_post_ra>
// kernel: tpu_custom_call.1
= control target key start
LH: loop header
LB: loop body
LE: loop exit
PB: predicated region body
PF: predicated region fallthrough
CT: control target
= control target key end

     0   :  { %7 = vsyncpa [#allocation5], 0  ;;  %s1692_s0 = inlined_call_operand.hbm [shape: f32[3,64], index: 0, kind: input, shape index: {}]   ;;  %s1693_s1 = inlined_call_operand.hbm [shape: f32[8,128], index: 1, kind: input, shape index: {}]   ;;  %s1694_s2 = inlined_call_operand.hbm [shape: f32[8,128], index: 2, kind: output, shape index: {}]  }
   0x1   :  { %8 = vsyncpa [#allocation3], 0 }
   0x2   :  { %9 = vsyncpa [#allocation4], 0  ;;  %s952_s11 = scalar_lea.hbm %s1692_s0, 64 }
   0x3   :  { %p953_p0 = scmp.ne.s32.totalorder %s1692_s0, %s952_s11  ;;  %p956_p1 = scmp.lt.u32.totalorder %s952_s11, %s1692_s0 }
   0x5   :  { %p958_p2 = pnand %p956_p1, %p953_p0 }
   0x7   :  { %961 = shalt.err (!%p958_p2)
}
   0x8   :  { %s1012_s16 = smov [#allocation2]   ;;  %s1013_s19 = smov [#allocation6]  }
   0x9   :  { %17 = dma.hbm_to_smem %s1692_s0, 64, %s1012_s16, [#allocation5]  }
   0xa   :  { %s24_s20 = sshll.u32 %s1013_s19, 4  ;;  %s962_s23 = scalar_lea.hbm %s1693_s1, 128  ;;  %s25_s20 = int_to_ptr.vmem [resolvable:$true] %s24_s20 }
   0xb   :  { %p963_p3 = scmp.ne.s32.totalorder %s1693_s1, %s962_s23  ;;  %p966_p4 = scmp.lt.u32.totalorder %s962_s23, %s1693_s1 }
   0xd   :  { %p968_p5 = pnand %p966_p4, %p963_p3 }
   0xf   :  { %971 = shalt.err (!%p968_p5)
}
  0x10   :  { %s972_s28 = scalar_lea.vmem %s25_s20, 128  ;;  %p977_p7 = scmp.lt.s32.totalorder %s25_s20, %s25_s20 }
  0x11   :  { %p973_p6 = scmp.ne.s32.totalorder %s25_s20, %s972_s28  ;;  %p978_p8 = scmp.lt.s32.totalorder %s972_s28, %s972_s28 }
  0x13   :  { %p979_p9 = por %p978_p8, %p977_p7 }
  0x15   :  { %p980_p10 = pnand %p979_p9, %p973_p6 }
  0x17   :  { %983 = shalt.err (!%p980_p10)
}
  0x18   :  { %27 = dma.hbm_to_vmem [thread:$0]  %s1693_s1, 128, %s25_s20, [#allocation3]  }
  0x19   :  { %1006 = dma.done.wait [#allocation5], 64  }
  0x1a   :  { %1007 = vsyncadd [#allocation5], 4294967232 }
  0x1b   :  { %1008 = dma.done.wait [#allocation3], 128  }
  0x1c   :  { %1009 = vsyncadd [#allocation3], 4294967168 }
  0x1d   :  { %34 = sfence }
  0x1e   :  { %s36_s30 = sld [smem:[#allocation2]]  ;;  %s759_s5 = sld [smem:[#allocation2 + $0x1]]  ;;  %v1060_v0 = vld [vmem:[#allocation6] sm:$0xff] }
  0x1f   :  { %s757_s3 = sld [smem:[#allocation2 + $0x80]]  ;;  %s760_s6 = sld [smem:[#allocation2 + $0x81]] }
  0x20   :  { %s1054_s4 = sld [smem:[#allocation2 + $0x100]]  ;;  %s1056_s7 = sld [smem:[#allocation2 + $0x101]] }
  0x21   :  { %s762_s8 = sld [smem:[#allocation2 + $0x2]]  ;;  %s765_s1 = sld [smem:[#allocation2 + $0x3]] }
  0x22   :  { %s1058_s9 = sld [smem:[#allocation2 + $0x82]]  ;;  %s1064_s11 = sld [smem:[#allocation2 + $0x83]] }
  0x23   :  { %s1062_s10 = sld [smem:[#allocation2 + $0x102]]  ;;  %s1066_s12 = sld [smem:[#allocation2 + $0x103]] }
  0x24   :  { %v39_v1 = vstv %s36_s30  ;;  %s1068_s13 = sld [smem:[#allocation2 + $0x4]]  ;;  %v50_v4 = vstv %s759_s5  ;;  %s1075_s16 = sld [smem:[#allocation2 + $0x5]] }
  0x25   :  { %v41_v2 = vstv %s757_s3  ;;  %s1070_s14 = sld [smem:[#allocation2 + $0x84]]  ;;  %v40_v3 = vmul.f32 %v39_v1, %v1060_v0  ;;  %v51_v5 = vmul.f32 %v50_v4, %v1060_v0  ;;  %v52_v6 = vstv %s760_s6  ;;  %s1078_s17 = sld [smem:[#allocation2 + $0x85]] }
  0x26   :  { %s1073_s15 = sld [smem:[#allocation2 + $0x104]]  ;;  %v44_v8 = vstv %s1054_s4  ;;  %s1082_s18 = sld [smem:[#allocation2 + $0x6]]  ;;  %v55_v12 = vstv %s1056_s7 }
  0x27   :  { %v42_v7 = vadd.f32 %v41_v2, %v40_v3  ;;  %v61_v9 = vstv %s762_s8  ;;  %s1084_s19 = sld [smem:[#allocation2 + $0x86]]  ;;  %v53_v11 = vadd.f32 %v52_v6, %v51_v5  ;;  %v72_v14 = vstv %s765_s1  ;;  %s1088_s20 = sld [smem:[#allocation2 + $0x105]] }
  0x28   :  { %v63_v10 = vstv %s1058_s9  ;;  %v62_v13 = vmul.f32 %v61_v9, %v1060_v0  ;;  %s1090_s21 = sld [smem:[#allocation2 + $0x7]]  ;;  %v73_v17 = vmul.f32 %v72_v14, %v1060_v0  ;;  %v74_v18 = vstv %s1064_s11  ;;  %s1095_s22 = sld [smem:[#allocation2 + $0x106]] }
  0x29   :  { %v43_v15 = vmax.f32 %v42_v7, 0.0  ;;  %v66_v16 = vstv %s1062_s10  ;;  %s1097_s23 = sld [smem:[#allocation2 + $0x87]]  ;;  %v54_v19 = vmax.f32 %v53_v11, 0.0  ;;  %s1101_s24 = sld [smem:[#allocation2 + $0x8]]  ;;  %v77_v25 = vstv %s1066_s12 }
  0x2a   :  { %v64_v20 = vadd.f32 %v63_v10, %v62_v13  ;;  %v83_v21 = vstv %s1068_s13  ;;  %s1103_s25 = sld [smem:[#allocation2 + $0x88]]  ;;  %v75_v24 = vadd.f32 %v74_v18, %v73_v17  ;;  %s1107_s26 = sld [smem:[#allocation2 + $0x107]]  ;;  %v94_v29 = vstv %s1075_s16 }
  0x2b   :  { %v85_v22 = vstv %s1070_s14  ;;  %v45_v23 = vmul.f32 %v44_v8, %v43_v15  ;;  %v84_v26 = vmul.f32 %v83_v21, %v1060_v0  ;;  %v56_v27 = vmul.f32 %v55_v12, %v54_v19  ;;  %s1111_s27 = sld [smem:[#allocation2 + $0x9]]  ;;  %s1117_s0 = sld [smem:[#allocation2 + $0x108]] }
  0x2c   :  { %v65_v28 = vmax.f32 %v64_v20, 0.0  ;;  %v96_v30 = vstv %s1078_s17  ;;  %s1113_s28 = sld [smem:[#allocation2 + $0x89]]  ;;  %v76_v31 = vmax.f32 %v75_v24, 0.0  ;;  %v88_v33 = vstv %s1073_s15  ;;  %s1121_s29 = sld [smem:[#allocation2 + $0xa]] }
  0x2d   :  { %v86_v32 = vadd.f32 %v85_v22, %v84_v26  ;;  %v95_v34 = vmul.f32 %v94_v29, %v1060_v0  ;;  %v57_v35 = vadd.f32 %v56_v27, %v45_v23  ;;  %v105_v37 = vstv %s1082_s18  ;;  %s1123_s30 = sld [smem:[#allocation2 + $0x8a]]  ;;  %s1126_s3 = sld [smem:[#allocation2 + $0x109]] }
  0x2e   :  { %v67_v36 = vmul.f32 %v66_v16, %v65_v28  ;;  %v107_v38 = vstv %s1084_s19  ;;  %v78_v39 = vmul.f32 %v77_v25, %v76_v31  ;;  %v106_v42 = vmul.f32 %v105_v37, %v1060_v0  ;;  %s1131_s4 = sld [smem:[#allocation2 + $0xb]]  ;;  %s1136_s6 = sld [smem:[#allocation2 + $0x10a]] }
  0x2f   :  { %v87_v40 = vmax.f32 %v86_v32, 0.0  ;;  %v97_v41 = vadd.f32 %v96_v30, %v95_v34  ;;  %v99_v44 = vstv %s1088_s20  ;;  %v116_v45 = vstv %s1090_s21  ;;  %s1133_s5 = sld [smem:[#allocation2 + $0x8b]]  ;;  %s1141_s7 = sld [smem:[#allocation2 + $0xc]] }
  0x30   :  { %v68_v43 = vadd.f32 %v67_v36, %v57_v35  ;;  %v118_v46 = vstv %s1097_s23  ;;  %v108_v49 = vadd.f32 %v107_v38, %v106_v42  ;;  %v117_v50 = vmul.f32 %v116_v45, %v1060_v0  ;;  %s1143_s8 = sld [smem:[#allocation2 + $0x8c]]  ;;  %s1146_s9 = sld [smem:[#allocation2 + $0x10b]] }
  0x31   :  { %v89_v47 = vmul.f32 %v88_v33, %v87_v40  ;;  %v98_v48 = vmax.f32 %v97_v41, 0.0  ;;  %v110_v52 = vstv %s1095_s22  ;;  %v127_v53 = vstv %s1101_s24  ;;  %s1151_s10 = sld [smem:[#allocation2 + $0xd]]  ;;  %s1156_s11 = sld [smem:[#allocation2 + $0x10c]] }
  0x32   :  { %v79_v51 = vadd.f32 %v78_v39, %v68_v43  ;;  %v129_v54 = vstv %s1103_s25  ;;  %v109_v56 = vmax.f32 %v108_v49, 0.0  ;;  %v119_v57 = vadd.f32 %v118_v46, %v117_v50  ;;  %s1153_s1 = sld [smem:[#allocation2 + $0x8d]]  ;;  %s1161_s12 = sld [smem:[#allocation2 + $0xe]] }
  0x33   :  { %v100_v55 = vmul.f32 %v99_v44, %v98_v48  ;;  %v128_v58 = vmul.f32 %v127_v53, %v1060_v0  ;;  %v121_v60 = vstv %s1107_s26  ;;  %v138_v61 = vstv %s1111_s27  ;;  %s1163_s13 = sld [smem:[#allocation2 + $0x8e]]  ;;  %s1166_s14 = sld [smem:[#allocation2 + $0x10d]] }
  0x34   :  { %v90_v59 = vadd.f32 %v89_v47, %v79_v51  ;;  %v140_v62 = vstv %s1113_s28  ;;  %v111_v63 = vmul.f32 %v110_v52, %v109_v56  ;;  %v120_v1 = vmax.f32 %v119_v57, 0.0  ;;  %s1171_s15 = sld [smem:[#allocation2 + $0xf]]  ;;  %s1176_s17 = sld [smem:[#allocation2 + $0x10e]] }
  0x35   :  { %v130_v2 = vadd.f32 %v129_v54, %v128_v58  ;;  %v139_v3 = vmul.f32 %v138_v61, %v1060_v0  ;;  %v132_v5 = vstv %s1117_s0  ;;  %v149_v6 = vstv %s1121_s29  ;;  %s1173_s16 = sld [smem:[#allocation2 + $0x8f]]  ;;  %s1181_s18 = sld [smem:[#allocation2 + $0x10]] }
  0x36   :  { %v101_v4 = vadd.f32 %v100_v55, %v90_v59  ;;  %v151_v7 = vstv %s1123_s30  ;;  %v122_v8 = vmul.f32 %v121_v60, %v120_v1  ;;  %v150_v11 = vmul.f32 %v149_v6, %v1060_v0  ;;  %s1183_s19 = sld [smem:[#allocation2 + $0x90]]  ;;  %s1186_s20 = sld [smem:[#allocation2 + $0x10f]] }
  0x37   :  { %v131_v9 = vmax.f32 %v130_v2, 0.0  ;;  %v141_v10 = vadd.f32 %v140_v62, %v139_v3  ;;  %v143_v13 = vstv %s1126_s3  ;;  %v160_v14 = vstv %s1131_s4  ;;  %s1191_s21 = sld [smem:[#allocation2 + $0x11]]  ;;  %s1196_s23 = sld [smem:[#allocation2 + $0x110]] }
  0x38   :  { %v112_v12 = vadd.f32 %v111_v63, %v101_v4  ;;  %v162_v15 = vstv %s1133_s5  ;;  %v152_v18 = vadd.f32 %v151_v7, %v150_v11  ;;  %v161_v19 = vmul.f32 %v160_v14, %v1060_v0  ;;  %s1193_s22 = sld [smem:[#allocation2 + $0x91]]  ;;  %s1201_s24 = sld [smem:[#allocation2 + $0x12]] }
  0x39   :  { %v133_v16 = vmul.f32 %v132_v5, %v131_v9  ;;  %v142_v17 = vmax.f32 %v141_v10, 0.0  ;;  %v154_v21 = vstv %s1136_s6  ;;  %v171_v22 = vstv %s1141_s7  ;;  %s1203_s25 = sld [smem:[#allocation2 + $0x92]]  ;;  %s1206_s26 = sld [smem:[#allocation2 + $0x111]] }
  0x3a   :  { %v123_v20 = vadd.f32 %v122_v8, %v112_v12  ;;  %v173_v23 = vstv %s1143_s8  ;;  %v153_v25 = vmax.f32 %v152_v18, 0.0  ;;  %v163_v26 = vadd.f32 %v162_v15, %v161_v19  ;;  %s1211_s27 = sld [smem:[#allocation2 + $0x13]]  ;;  %s1216_s0 = sld [smem:[#allocation2 + $0x112]] }
  0x3b   :  { %v144_v24 = vmul.f32 %v143_v13, %v142_v17  ;;  %v172_v27 = vmul.f32 %v171_v22, %v1060_v0  ;;  %v165_v29 = vstv %s1146_s9  ;;  %v182_v30 = vstv %s1151_s10  ;;  %s1213_s28 = sld [smem:[#allocation2 + $0x93]]  ;;  %s1221_s29 = sld [smem:[#allocation2 + $0x14]] }
  0x3c   :  { %v134_v28 = vadd.f32 %v133_v16, %v123_v20  ;;  %v184_v31 = vstv %s1153_s1  ;;  %v155_v32 = vmul.f32 %v154_v21, %v153_v25  ;;  %v164_v33 = vmax.f32 %v163_v26, 0.0  ;;  %s1223_s30 = sld [smem:[#allocation2 + $0x94]]  ;;  %s1226_s3 = sld [smem:[#allocation2 + $0x113]] }
  0x3d   :  { %v174_v34 = vadd.f32 %v173_v23, %v172_v27  ;;  %v183_v35 = vmul.f32 %v182_v30, %v1060_v0  ;;  %v176_v37 = vstv %s1156_s11  ;;  %v193_v38 = vstv %s1161_s12  ;;  %s1231_s4 = sld [smem:[#allocation2 + $0x15]]  ;;  %s1236_s6 = sld [smem:[#allocation2 + $0x114]] }
  0x3e   :  { %v145_v36 = vadd.f32 %v144_v24, %v134_v28  ;;  %v195_v39 = vstv %s1163_s13  ;;  %v166_v40 = vmul.f32 %v165_v29, %v164_v33  ;;  %v194_v43 = vmul.f32 %v193_v38, %v1060_v0  ;;  %s1233_s5 = sld [smem:[#allocation2 + $0x95]]  ;;  %s1241_s7 = sld [smem:[#allocation2 + $0x16]] }
  0x3f   :  { %v175_v41 = vmax.f32 %v174_v34, 0.0  ;;  %v185_v42 = vadd.f32 %v184_v31, %v183_v35  ;;  %v187_v45 = vstv %s1166_s14  ;;  %v204_v46 = vstv %s1171_s15  ;;  %s1243_s8 = sld [smem:[#allocation2 + $0x96]]  ;;  %s1246_s9 = sld [smem:[#allocation2 + $0x115]] }
  0x40   :  { %v156_v44 = vadd.f32 %v155_v32, %v145_v36  ;;  %v206_v47 = vstv %s1173_s16  ;;  %v196_v50 = vadd.f32 %v195_v39, %v194_v43  ;;  %v205_v51 = vmul.f32 %v204_v46, %v1060_v0  ;;  %s1251_s10 = sld [smem:[#allocation2 + $0x17]]  ;;  %s1256_s11 = sld [smem:[#allocation2 + $0x116]] }
  0x41   :  { %v177_v48 = vmul.f32 %v176_v37, %v175_v41  ;;  %v186_v49 = vmax.f32 %v185_v42, 0.0  ;;  %v198_v53 = vstv %s1176_s17  ;;  %v215_v54 = vstv %s1181_s18  ;;  %s1253_s1 = sld [smem:[#allocation2 + $0x97]]  ;;  %s1261_s12 = sld [smem:[#allocation2 + $0x18]] }
  0x42   :  { %v167_v52 = vadd.f32 %v166_v40, %v156_v44  ;;  %v217_v55 = vstv %s1183_s19  ;;  %v197_v57 = vmax.f32 %v196_v50, 0.0  ;;  %v207_v58 = vadd.f32 %v206_v47, %v205_v51  ;;  %s1263_s13 = sld [smem:[#allocation2 + $0x98]]  ;;  %s1266_s14 = sld [smem:[#allocation2 + $0x117]] }
  0x43   :  { %v188_v56 = vmul.f32 %v187_v45, %v186_v49  ;;  %v216_v59 = vmul.f32 %v215_v54, %v1060_v0  ;;  %v209_v61 = vstv %s1186_s20  ;;  %v226_v62 = vstv %s1191_s21  ;;  %s1271_s15 = sld [smem:[#allocation2 + $0x19]]  ;;  %s1276_s17 = sld [smem:[#allocation2 + $0x118]] }
  0x44   :  { %v178_v60 = vadd.f32 %v177_v48, %v167_v52  ;;  %v228_v63 = vstv %s1193_s22  ;;  %v199_v1 = vmul.f32 %v198_v53, %v197_v57  ;;  %v208_v2 = vmax.f32 %v207_v58, 0.0  ;;  %s1273_s16 = sld [smem:[#allocation2 + $0x99]]  ;;  %s1281_s18 = sld [smem:[#allocation2 + $0x1a]] }
  0x45   :  { %v218_v3 = vadd.f32 %v217_v55, %v216_v59  ;;  %v227_v4 = vmul.f32 %v226_v62, %v1060_v0  ;;  %v220_v6 = vstv %s1196_s23  ;;  %v237_v7 = vstv %s1201_s24  ;;  %s1283_s19 = sld [smem:[#allocation2 + $0x9a]]  ;;  %s1286_s20 = sld [smem:[#allocation2 + $0x119]] }
  0x46   :  { %v189_v5 = vadd.f32 %v188_v56, %v178_v60  ;;  %v239_v8 = vstv %s1203_s25  ;;  %v210_v9 = vmul.f32 %v209_v61, %v208_v2  ;;  %v238_v12 = vmul.f32 %v237_v7, %v1060_v0  ;;  %s1291_s21 = sld [smem:[#allocation2 + $0x1b]]  ;;  %s1296_s23 = sld [smem:[#allocation2 + $0x11a]] }
  0x47   :  { %v219_v10 = vmax.f32 %v218_v3, 0.0  ;;  %v229_v11 = vadd.f32 %v228_v63, %v227_v4  ;;  %v231_v14 = vstv %s1206_s26  ;;  %v248_v15 = vstv %s1211_s27  ;;  %s1293_s22 = sld [smem:[#allocation2 + $0x9b]]  ;;  %s1301_s24 = sld [smem:[#allocation2 + $0x1c]] }
  0x48   :  { %v200_v13 = vadd.f32 %v199_v1, %v189_v5  ;;  %v250_v16 = vstv %s1213_s28  ;;  %v240_v19 = vadd.f32 %v239_v8, %v238_v12  ;;  %v249_v20 = vmul.f32 %v248_v15, %v1060_v0  ;;  %s1303_s25 = sld [smem:[#allocation2 + $0x9c]]  ;;  %s1306_s26 = sld [smem:[#allocation2 + $0x11b]] }
  0x49   :  { %v221_v17 = vmul.f32 %v220_v6, %v219_v10  ;;  %v230_v18 = vmax.f32 %v229_v11, 0.0  ;;  %v242_v22 = vstv %s1216_s0  ;;  %v259_v23 = vstv %s1221_s29  ;;  %s1311_s27 = sld [smem:[#allocation2 + $0x1d]]  ;;  %s1316_s0 = sld [smem:[#allocation2 + $0x11c]] }
  0x4a   :  { %v211_v21 = vadd.f32 %v210_v9, %v200_v13  ;;  %v261_v24 = vstv %s1223_s30  ;;  %v241_v26 = vmax.f32 %v240_v19, 0.0  ;;  %v251_v27 = vadd.f32 %v250_v16, %v249_v20  ;;  %s1313_s28 = sld [smem:[#allocation2 + $0x9d]]  ;;  %s1321_s29 = sld [smem:[#allocation2 + $0x1e]] }
  0x4b   :  { %v232_v25 = vmul.f32 %v231_v14, %v230_v18  ;;  %v260_v28 = vmul.f32 %v259_v23, %v1060_v0  ;;  %v253_v30 = vstv %s1226_s3  ;;  %v270_v31 = vstv %s1231_s4  ;;  %s1323_s30 = sld [smem:[#allocation2 + $0x9e]]  ;;  %s1326_s3 = sld [smem:[#allocation2 + $0x11d]] }
  0x4c   :  { %v222_v29 = vadd.f32 %v221_v17, %v211_v21  ;;  %v272_v32 = vstv %s1233_s5  ;;  %v243_v33 = vmul.f32 %v242_v22, %v241_v26  ;;  %v252_v34 = vmax.f32 %v251_v27, 0.0  ;;  %s1331_s4 = sld [smem:[#allocation2 + $0x1f]] }
  0x4d   :  { %v262_v35 = vadd.f32 %v261_v24, %v260_v28  ;;  %v271_v36 = vmul.f32 %v270_v31, %v1060_v0  ;;  %v264_v38 = vstv %s1236_s6  ;;  %v281_v39 = vstv %s1241_s7  ;;  %s1333_s5 = sld [smem:[#allocation2 + $0x9f]]  ;;  %s1336_s6 = sld [smem:[#allocation2 + $0x11e]] }
  0x4e   :  { %v233_v37 = vadd.f32 %v232_v25, %v222_v29  ;;  %v283_v40 = vstv %s1243_s8  ;;  %v254_v41 = vmul.f32 %v253_v30, %v252_v34  ;;  %v282_v44 = vmul.f32 %v281_v39, %v1060_v0  ;;  %s1341_s7 = sld [smem:[#allocation2 + $0x20]] }
  0x4f   :  { %v263_v42 = vmax.f32 %v262_v35, 0.0  ;;  %v273_v43 = vadd.f32 %v272_v32, %v271_v36  ;;  %v275_v46 = vstv %s1246_s9  ;;  %v292_v47 = vstv %s1251_s10  ;;  %s1343_s8 = sld [smem:[#allocation2 + $0xa0]]  ;;  %s1346_s9 = sld [smem:[#allocation2 + $0x11f]] }
  0x50   :  { %v244_v45 = vadd.f32 %v243_v33, %v233_v37  ;;  %v294_v48 = vstv %s1253_s1  ;;  %v284_v51 = vadd.f32 %v283_v40, %v282_v44  ;;  %v293_v52 = vmul.f32 %v292_v47, %v1060_v0  ;;  %s1351_s10 = sld [smem:[#allocation2 + $0x21]] }
  0x51   :  { %v265_v49 = vmul.f32 %v264_v38, %v263_v42  ;;  %v274_v50 = vmax.f32 %v273_v43, 0.0  ;;  %v286_v54 = vstv %s1256_s11  ;;  %v303_v55 = vstv %s1261_s12  ;;  %s1353_s1 = sld [smem:[#allocation2 + $0xa1]]  ;;  %s1356_s11 = sld [smem:[#allocation2 + $0x120]] }
  0x52   :  { %v255_v53 = vadd.f32 %v254_v41, %v244_v45  ;;  %v305_v56 = vstv %s1263_s13  ;;  %v285_v58 = vmax.f32 %v284_v51, 0.0  ;;  %v295_v59 = vadd.f32 %v294_v48, %v293_v52  ;;  %s1361_s12 = sld [smem:[#allocation2 + $0x22]] }
  0x53   :  { %v276_v57 = vmul.f32 %v275_v46, %v274_v50  ;;  %v304_v60 = vmul.f32 %v303_v55, %v1060_v0  ;;  %v297_v62 = vstv %s1266_s14  ;;  %v314_v63 = vstv %s1271_s15  ;;  %s1363_s13 = sld [smem:[#allocation2 + $0xa2]]  ;;  %s1366_s14 = sld [smem:[#allocation2 + $0x121]] }
  0x54   :  { %v266_v61 = vadd.f32 %v265_v49, %v255_v53  ;;  %v316_v1 = vstv %s1273_s16  ;;  %v287_v2 = vmul.f32 %v286_v54, %v285_v58  ;;  %v296_v3 = vmax.f32 %v295_v59, 0.0  ;;  %s1371_s15 = sld [smem:[#allocation2 + $0x23]] }
  0x55   :  { %v306_v4 = vadd.f32 %v305_v56, %v304_v60  ;;  %v315_v5 = vmul.f32 %v314_v63, %v1060_v0  ;;  %v308_v7 = vstv %s1276_s17  ;;  %v325_v8 = vstv %s1281_s18  ;;  %s1373_s16 = sld [smem:[#allocation2 + $0xa3]]  ;;  %s1376_s17 = sld [smem:[#allocation2 + $0x122]] }
  0x56   :  { %v277_v6 = vadd.f32 %v276_v57, %v266_v61  ;;  %v327_v9 = vstv %s1283_s19  ;;  %v298_v10 = vmul.f32 %v297_v62, %v296_v3  ;;  %v326_v13 = vmul.f32 %v325_v8, %v1060_v0  ;;  %s1381_s18 = sld [smem:[#allocation2 + $0x24]] }
  0x57   :  { %v307_v11 = vmax.f32 %v306_v4, 0.0  ;;  %v317_v12 = vadd.f32 %v316_v1, %v315_v5  ;;  %v319_v15 = vstv %s1286_s20  ;;  %v336_v16 = vstv %s1291_s21  ;;  %s1383_s19 = sld [smem:[#allocation2 + $0xa4]]  ;;  %s1386_s20 = sld [smem:[#allocation2 + $0x123]] }
  0x58   :  { %v288_v14 = vadd.f32 %v287_v2, %v277_v6  ;;  %v338_v17 = vstv %s1293_s22  ;;  %v328_v20 = vadd.f32 %v327_v9, %v326_v13  ;;  %v337_v21 = vmul.f32 %v336_v16, %v1060_v0  ;;  %s1391_s21 = sld [smem:[#allocation2 + $0x25]] }
  0x59   :  { %v309_v18 = vmul.f32 %v308_v7, %v307_v11  ;;  %v318_v19 = vmax.f32 %v317_v12, 0.0  ;;  %v330_v23 = vstv %s1296_s23  ;;  %v347_v24 = vstv %s1301_s24  ;;  %s1393_s22 = sld [smem:[#allocation2 + $0xa5]]  ;;  %s1396_s23 = sld [smem:[#allocation2 + $0x124]] }
  0x5a   :  { %v299_v22 = vadd.f32 %v298_v10, %v288_v14  ;;  %v349_v25 = vstv %s1303_s25  ;;  %v329_v27 = vmax.f32 %v328_v20, 0.0  ;;  %v339_v28 = vadd.f32 %v338_v17, %v337_v21  ;;  %s1401_s24 = sld [smem:[#allocation2 + $0x26]] }
  0x5b   :  { %v320_v26 = vmul.f32 %v319_v15, %v318_v19  ;;  %v348_v29 = vmul.f32 %v347_v24, %v1060_v0  ;;  %v341_v31 = vstv %s1306_s26  ;;  %v358_v32 = vstv %s1311_s27  ;;  %s1403_s25 = sld [smem:[#allocation2 + $0xa6]]  ;;  %s1406_s26 = sld [smem:[#allocation2 + $0x125]] }
  0x5c   :  { %v310_v30 = vadd.f32 %v309_v18, %v299_v22  ;;  %v360_v33 = vstv %s1313_s28  ;;  %v331_v34 = vmul.f32 %v330_v23, %v329_v27  ;;  %v340_v35 = vmax.f32 %v339_v28, 0.0  ;;  %s1411_s27 = sld [smem:[#allocation2 + $0x27]] }
  0x5d   :  { %v350_v36 = vadd.f32 %v349_v25, %v348_v29  ;;  %v359_v37 = vmul.f32 %v358_v32, %v1060_v0  ;;  %v352_v39 = vstv %s1316_s0  ;;  %v369_v40 = vstv %s1321_s29  ;;  %s1413_s28 = sld [smem:[#allocation2 + $0xa7]]  ;;  %s1416_s0 = sld [smem:[#allocation2 + $0x126]] }
  0x5e   :  { %v321_v38 = vadd.f32 %v320_v26, %v310_v30  ;;  %v371_v41 = vstv %s1323_s30  ;;  %v342_v42 = vmul.f32 %v341_v31, %v340_v35  ;;  %v370_v45 = vmul.f32 %v369_v40, %v1060_v0  ;;  %s1421_s29 = sld [smem:[#allocation2 + $0x28]] }
  0x5f   :  { %v351_v43 = vmax.f32 %v350_v36, 0.0  ;;  %v361_v44 = vadd.f32 %v360_v33, %v359_v37  ;;  %v363_v47 = vstv %s1326_s3  ;;  %v380_v48 = vstv %s1331_s4  ;;  %s1423_s30 = sld [smem:[#allocation2 + $0xa8]]  ;;  %s1426_s3 = sld [smem:[#allocation2 + $0x127]] }
  0x60   :  { %v332_v46 = vadd.f32 %v331_v34, %v321_v38  ;;  %v382_v49 = vstv %s1333_s5  ;;  %v372_v52 = vadd.f32 %v371_v41, %v370_v45  ;;  %v381_v53 = vmul.f32 %v380_v48, %v1060_v0  ;;  %s1431_s4 = sld [smem:[#allocation2 + $0x29]] }
  0x61   :  { %v353_v50 = vmul.f32 %v352_v39, %v351_v43  ;;  %v362_v51 = vmax.f32 %v361_v44, 0.0  ;;  %v374_v55 = vstv %s1336_s6  ;;  %v391_v56 = vstv %s1341_s7  ;;  %s1433_s5 = sld [smem:[#allocation2 + $0xa9]]  ;;  %s1436_s6 = sld [smem:[#allocation2 + $0x128]] }
  0x62   :  { %v343_v54 = vadd.f32 %v342_v42, %v332_v46  ;;  %v393_v57 = vstv %s1343_s8  ;;  %v373_v59 = vmax.f32 %v372_v52, 0.0  ;;  %v383_v60 = vadd.f32 %v382_v49, %v381_v53  ;;  %s1441_s7 = sld [smem:[#allocation2 + $0x2a]] }
  0x63   :  { %v364_v58 = vmul.f32 %v363_v47, %v362_v51  ;;  %v392_v61 = vmul.f32 %v391_v56, %v1060_v0  ;;  %v385_v63 = vstv %s1346_s9  ;;  %v402_v1 = vstv %s1351_s10  ;;  %s1443_s8 = sld [smem:[#allocation2 + $0xaa]]  ;;  %s1446_s9 = sld [smem:[#allocation2 + $0x129]] }
  0x64   :  { %v354_v62 = vadd.f32 %v353_v50, %v343_v54  ;;  %v404_v2 = vstv %s1353_s1  ;;  %v375_v3 = vmul.f32 %v374_v55, %v373_v59  ;;  %v384_v4 = vmax.f32 %v383_v60, 0.0  ;;  %s1451_s10 = sld [smem:[#allocation2 + $0x2b]] }
  0x65   :  { %v394_v5 = vadd.f32 %v393_v57, %v392_v61  ;;  %v403_v6 = vmul.f32 %v402_v1, %v1060_v0  ;;  %v396_v8 = vstv %s1356_s11  ;;  %v413_v9 = vstv %s1361_s12  ;;  %s1453_s1 = sld [smem:[#allocation2 + $0xab]]  ;;  %s1456_s11 = sld [smem:[#allocation2 + $0x12a]] }
  0x66   :  { %v365_v7 = vadd.f32 %v364_v58, %v354_v62  ;;  %v415_v10 = vstv %s1363_s13  ;;  %v386_v11 = vmul.f32 %v385_v63, %v384_v4  ;;  %v414_v14 = vmul.f32 %v413_v9, %v1060_v0  ;;  %s1461_s12 = sld [smem:[#allocation2 + $0x2c]] }
  0x67   :  { %v395_v12 = vmax.f32 %v394_v5, 0.0  ;;  %v405_v13 = vadd.f32 %v404_v2, %v403_v6  ;;  %v407_v16 = vstv %s1366_s14  ;;  %v424_v17 = vstv %s1371_s15  ;;  %s1463_s13 = sld [smem:[#allocation2 + $0xac]]  ;;  %s1466_s14 = sld [smem:[#allocation2 + $0x12b]] }
  0x68   :  { %v376_v15 = vadd.f32 %v375_v3, %v365_v7  ;;  %v426_v18 = vstv %s1373_s16  ;;  %v416_v21 = vadd.f32 %v415_v10, %v414_v14  ;;  %v425_v22 = vmul.f32 %v424_v17, %v1060_v0  ;;  %s1471_s15 = sld [smem:[#allocation2 + $0x2d]] }
  0x69   :  { %v397_v19 = vmul.f32 %v396_v8, %v395_v12  ;;  %v406_v20 = vmax.f32 %v405_v13, 0.0  ;;  %v418_v24 = vstv %s1376_s17  ;;  %v435_v25 = vstv %s1381_s18  ;;  %s1473_s16 = sld [smem:[#allocation2 + $0xad]]  ;;  %s1476_s17 = sld [smem:[#allocation2 + $0x12c]] }
  0x6a   :  { %v387_v23 = vadd.f32 %v386_v11, %v376_v15  ;;  %v437_v26 = vstv %s1383_s19  ;;  %v417_v28 = vmax.f32 %v416_v21, 0.0  ;;  %v427_v29 = vadd.f32 %v426_v18, %v425_v22  ;;  %s1481_s18 = sld [smem:[#allocation2 + $0x2e]] }
  0x6b   :  { %v408_v27 = vmul.f32 %v407_v16, %v406_v20  ;;  %v436_v30 = vmul.f32 %v435_v25, %v1060_v0  ;;  %v429_v32 = vstv %s1386_s20  ;;  %v446_v33 = vstv %s1391_s21  ;;  %s1483_s19 = sld [smem:[#allocation2 + $0xae]]  ;;  %s1486_s20 = sld [smem:[#allocation2 + $0x12d]] }
  0x6c   :  { %v398_v31 = vadd.f32 %v397_v19, %v387_v23  ;;  %v448_v34 = vstv %s1393_s22  ;;  %v419_v35 = vmul.f32 %v418_v24, %v417_v28  ;;  %v428_v36 = vmax.f32 %v427_v29, 0.0  ;;  %s1491_s21 = sld [smem:[#allocation2 + $0x2f]] }
  0x6d   :  { %v438_v37 = vadd.f32 %v437_v26, %v436_v30  ;;  %v447_v38 = vmul.f32 %v446_v33, %v1060_v0  ;;  %v440_v40 = vstv %s1396_s23  ;;  %v457_v41 = vstv %s1401_s24  ;;  %s1493_s22 = sld [smem:[#allocation2 + $0xaf]]  ;;  %s1496_s23 = sld [smem:[#allocation2 + $0x12e]] }
  0x6e   :  { %v409_v39 = vadd.f32 %v408_v27, %v398_v31  ;;  %v459_v42 = vstv %s1403_s25  ;;  %v430_v43 = vmul.f32 %v429_v32, %v428_v36  ;;  %v458_v46 = vmul.f32 %v457_v41, %v1060_v0  ;;  %s1501_s24 = sld [smem:[#allocation2 + $0x30]] }
  0x6f   :  { %v439_v44 = vmax.f32 %v438_v37, 0.0  ;;  %v449_v45 = vadd.f32 %v448_v34, %v447_v38  ;;  %v451_v48 = vstv %s1406_s26  ;;  %v468_v49 = vstv %s1411_s27  ;;  %s1503_s25 = sld [smem:[#allocation2 + $0xb0]]  ;;  %s1506_s26 = sld [smem:[#allocation2 + $0x12f]] }
  0x70   :  { %v420_v47 = vadd.f32 %v419_v35, %v409_v39  ;;  %v470_v50 = vstv %s1413_s28  ;;  %v460_v53 = vadd.f32 %v459_v42, %v458_v46  ;;  %v469_v54 = vmul.f32 %v468_v49, %v1060_v0  ;;  %s1511_s27 = sld [smem:[#allocation2 + $0x31]] }
  0x71   :  { %v441_v51 = vmul.f32 %v440_v40, %v439_v44  ;;  %v450_v52 = vmax.f32 %v449_v45, 0.0  ;;  %v462_v56 = vstv %s1416_s0  ;;  %v479_v57 = vstv %s1421_s29  ;;  %s1513_s28 = sld [smem:[#allocation2 + $0xb1]]  ;;  %s1516_s0 = sld [smem:[#allocation2 + $0x130]] }
  0x72   :  { %v431_v55 = vadd.f32 %v430_v43, %v420_v47  ;;  %v481_v58 = vstv %s1423_s30  ;;  %v461_v60 = vmax.f32 %v460_v53, 0.0  ;;  %v471_v61 = vadd.f32 %v470_v50, %v469_v54  ;;  %s1521_s29 = sld [smem:[#allocation2 + $0x32]] }
  0x73   :  { %v452_v59 = vmul.f32 %v451_v48, %v450_v52  ;;  %v480_v62 = vmul.f32 %v479_v57, %v1060_v0  ;;  %v473_v1 = vstv %s1426_s3  ;;  %v490_v2 = vstv %s1431_s4  ;;  %s1523_s30 = sld [smem:[#allocation2 + $0xb2]]  ;;  %s1526_s3 = sld [smem:[#allocation2 + $0x131]] }
  0x74   :  { %v442_v63 = vadd.f32 %v441_v51, %v431_v55  ;;  %v492_v3 = vstv %s1433_s5  ;;  %v463_v4 = vmul.f32 %v462_v56, %v461_v60  ;;  %v472_v5 = vmax.f32 %v471_v61, 0.0  ;;  %s1531_s4 = sld [smem:[#allocation2 + $0x33]]  ;;  %v1535_v55 = vld [vmem:[#allocation6] sm:$0xff] }
  0x75   :  { %v482_v6 = vadd.f32 %v481_v58, %v480_v62  ;;  %v491_v7 = vmul.f32 %v490_v2, %v1060_v0  ;;  %v484_v9 = vstv %s1436_s6  ;;  %v501_v10 = vstv %s1441_s7  ;;  %s1533_s5 = sld [smem:[#allocation2 + $0xb3]]  ;;  %s1538_s6 = sld [smem:[#allocation2 + $0x132]] }
  0x76   :  { %v453_v8 = vadd.f32 %v452_v59, %v442_v63  ;;  %v503_v11 = vstv %s1443_s8  ;;  %v474_v12 = vmul.f32 %v473_v1, %v472_v5  ;;  %v502_v15 = vmul.f32 %v501_v10, %v1060_v0  ;;  %s1543_s7 = sld [smem:[#allocation2 + $0x34]] }
  0x77   :  { %v483_v13 = vmax.f32 %v482_v6, 0.0  ;;  %v493_v14 = vadd.f32 %v492_v3, %v491_v7  ;;  %v495_v17 = vstv %s1446_s9  ;;  %v512_v18 = vstv %s1451_s10  ;;  %s1545_s8 = sld [smem:[#allocation2 + $0xb4]]  ;;  %s1548_s9 = sld [smem:[#allocation2 + $0x133]] }
  0x78   :  { %v464_v16 = vadd.f32 %v463_v4, %v453_v8  ;;  %v514_v19 = vstv %s1453_s1  ;;  %v504_v22 = vadd.f32 %v503_v11, %v502_v15  ;;  %v513_v23 = vmul.f32 %v512_v18, %v1060_v0  ;;  %s1553_s10 = sld [smem:[#allocation2 + $0x35]] }
  0x79   :  { %v485_v20 = vmul.f32 %v484_v9, %v483_v13  ;;  %v494_v21 = vmax.f32 %v493_v14, 0.0  ;;  %v506_v25 = vstv %s1456_s11  ;;  %v523_v26 = vstv %s1461_s12  ;;  %s1555_s1 = sld [smem:[#allocation2 + $0xb5]]  ;;  %s1558_s11 = sld [smem:[#allocation2 + $0x134]] }
  0x7a   :  { %v475_v24 = vadd.f32 %v474_v12, %v464_v16  ;;  %v525_v27 = vstv %s1463_s13  ;;  %v505_v29 = vmax.f32 %v504_v22, 0.0  ;;  %v515_v30 = vadd.f32 %v514_v19, %v513_v23  ;;  %s1563_s12 = sld [smem:[#allocation2 + $0x36]] }
  0x7b   :  { %v496_v28 = vmul.f32 %v495_v17, %v494_v21  ;;  %v524_v31 = vmul.f32 %v523_v26, %v1060_v0  ;;  %v517_v33 = vstv %s1466_s14  ;;  %v534_v34 = vstv %s1471_s15  ;;  %s1565_s13 = sld [smem:[#allocation2 + $0xb6]]  ;;  %s1568_s14 = sld [smem:[#allocation2 + $0x135]] }
  0x7c   :  { %v486_v32 = vadd.f32 %v485_v20, %v475_v24  ;;  %v536_v35 = vstv %s1473_s16  ;;  %v507_v36 = vmul.f32 %v506_v25, %v505_v29  ;;  %v516_v37 = vmax.f32 %v515_v30, 0.0  ;;  %s1573_s15 = sld [smem:[#allocation2 + $0x37]] }
  0x7d   :  { %v526_v38 = vadd.f32 %v525_v27, %v524_v31  ;;  %v535_v39 = vmul.f32 %v534_v34, %v1060_v0  ;;  %v528_v41 = vstv %s1476_s17  ;;  %v545_v42 = vstv %s1481_s18  ;;  %s1575_s16 = sld [smem:[#allocation2 + $0xb7]]  ;;  %s1578_s17 = sld [smem:[#allocation2 + $0x136]] }
  0x7e   :  { %v497_v40 = vadd.f32 %v496_v28, %v486_v32  ;;  %v547_v43 = vstv %s1483_s19  ;;  %v518_v44 = vmul.f32 %v517_v33, %v516_v37  ;;  %v546_v47 = vmul.f32 %v545_v42, %v1060_v0  ;;  %s1583_s18 = sld [smem:[#allocation2 + $0x38]] }
  0x7f   :  { %v527_v45 = vmax.f32 %v526_v38, 0.0  ;;  %v537_v46 = vadd.f32 %v536_v35, %v535_v39  ;;  %v539_v49 = vstv %s1486_s20  ;;  %v556_v50 = vstv %s1491_s21  ;;  %s1585_s19 = sld [smem:[#allocation2 + $0xb8]]  ;;  %s1588_s20 = sld [smem:[#allocation2 + $0x137]] }
  0x80   :  { %v508_v48 = vadd.f32 %v507_v36, %v497_v40  ;;  %v558_v51 = vstv %s1493_s22  ;;  %v548_v54 = vadd.f32 %v547_v43, %v546_v47  ;;  %v557_v0 = vmul.f32 %v1535_v55, %v556_v50  ;;  %s1593_s21 = sld [smem:[#allocation2 + $0x39]] }
  0x81   :  { %v529_v52 = vmul.f32 %v528_v41, %v527_v45  ;;  %v538_v53 = vmax.f32 %v537_v46, 0.0  ;;  %v550_v57 = vstv %s1496_s23  ;;  %v567_v58 = vstv %s1501_s24  ;;  %s1595_s22 = sld [smem:[#allocation2 + $0xb9]]  ;;  %s1598_s23 = sld [smem:[#allocation2 + $0x138]] }
  0x82   :  { %v519_v56 = vadd.f32 %v518_v44, %v508_v48  ;;  %v569_v59 = vstv %s1503_s25  ;;  %v549_v61 = vmax.f32 %v548_v54, 0.0  ;;  %v559_v62 = vadd.f32 %v558_v51, %v557_v0  ;;  %s1603_s24 = sld [smem:[#allocation2 + $0x3a]] }
  0x83   :  { %v540_v60 = vmul.f32 %v539_v49, %v538_v53  ;;  %v568_v63 = vmul.f32 %v1535_v55, %v567_v58  ;;  %v561_v2 = vstv %s1506_s26  ;;  %v578_v3 = vstv %s1511_s27  ;;  %s1605_s25 = sld [smem:[#allocation2 + $0xba]]  ;;  %s1608_s26 = sld [smem:[#allocation2 + $0x139]] }
  0x84   :  { %v530_v1 = vadd.f32 %v529_v52, %v519_v56  ;;  %v580_v4 = vstv %s1513_s28  ;;  %v551_v5 = vmul.f32 %v550_v57, %v549_v61  ;;  %v560_v6 = vmax.f32 %v559_v62, 0.0  ;;  %s1613_s27 = sld [smem:[#allocation2 + $0x3b]] }
  0x85   :  { %v570_v7 = vadd.f32 %v569_v59, %v568_v63  ;;  %v579_v8 = vmul.f32 %v1535_v55, %v578_v3  ;;  %v572_v10 = vstv %s1516_s0  ;;  %v589_v11 = vstv %s1521_s29  ;;  %s1615_s28 = sld [smem:[#allocation2 + $0xbb]]  ;;  %s1618_s0 = sld [smem:[#allocation2 + $0x13a]] }
  0x86   :  { %v541_v9 = vadd.f32 %v540_v60, %v530_v1  ;;  %v591_v12 = vstv %s1523_s30  ;;  %v562_v13 = vmul.f32 %v561_v2, %v560_v6  ;;  %v590_v16 = vmul.f32 %v1535_v55, %v589_v11  ;;  %s1623_s29 = sld [smem:[#allocation2 + $0x3c]] }
  0x87   :  { %v571_v14 = vmax.f32 %v570_v7, 0.0  ;;  %v581_v15 = vadd.f32 %v580_v4, %v579_v8  ;;  %v583_v18 = vstv %s1526_s3  ;;  %v600_v19 = vstv %s1531_s4  ;;  %s1625_s30 = sld [smem:[#allocation2 + $0xbc]]  ;;  %s1628_s3 = sld [smem:[#allocation2 + $0x13b]] }
  0x88   :  { %v552_v17 = vadd.f32 %v551_v5, %v541_v9  ;;  %v602_v20 = vstv %s1533_s5  ;;  %v592_v23 = vadd.f32 %v591_v12, %v590_v16  ;;  %v601_v24 = vmul.f32 %v1535_v55, %v600_v19  ;;  %s1633_s4 = sld [smem:[#allocation2 + $0x3d]] }
  0x89   :  { %v573_v21 = vmul.f32 %v572_v10, %v571_v14  ;;  %v582_v22 = vmax.f32 %v581_v15, 0.0  ;;  %v594_v26 = vstv %s1538_s6  ;;  %v611_v27 = vstv %s1543_s7  ;;  %s1635_s5 = sld [smem:[#allocation2 + $0xbd]]  ;;  %s1638_s6 = sld [smem:[#allocation2 + $0x13c]] }
  0x8a   :  { %v563_v25 = vadd.f32 %v562_v13, %v552_v17  ;;  %v613_v28 = vstv %s1545_s8  ;;  %v593_v30 = vmax.f32 %v592_v23, 0.0  ;;  %v603_v31 = vadd.f32 %v602_v20, %v601_v24  ;;  %s1643_s7 = sld [smem:[#allocation2 + $0x3e]] }
  0x8b   :  { %v584_v29 = vmul.f32 %v583_v18, %v582_v22  ;;  %v612_v32 = vmul.f32 %v1535_v55, %v611_v27  ;;  %v605_v34 = vstv %s1548_s9  ;;  %v622_v35 = vstv %s1553_s10  ;;  %s1645_s8 = sld [smem:[#allocation2 + $0xbe]]  ;;  %s1648_s9 = sld [smem:[#allocation2 + $0x13d]] }
  0x8c   :  { %v574_v33 = vadd.f32 %v573_v21, %v563_v25  ;;  %v624_v36 = vstv %s1555_s1  ;;  %v595_v37 = vmul.f32 %v594_v26, %v593_v30  ;;  %v604_v38 = vmax.f32 %v603_v31, 0.0  ;;  %s1653_s10 = sld [smem:[#allocation2 + $0x3f]] }
  0x8d   :  { %v614_v39 = vadd.f32 %v613_v28, %v612_v32  ;;  %v623_v40 = vmul.f32 %v1535_v55, %v622_v35  ;;  %v616_v42 = vstv %s1558_s11  ;;  %v633_v43 = vstv %s1563_s12  ;;  %s1655_s1 = sld [smem:[#allocation2 + $0xbf]]  ;;  %s1661_s11 = sld [smem:[#allocation2 + $0x13e]] }
  0x8e   :  { %v585_v41 = vadd.f32 %v584_v29, %v574_v33  ;;  %v635_v44 = vstv %s1565_s13  ;;  %v606_v45 = vmul.f32 %v605_v34, %v604_v38  ;;  %v634_v48 = vmul.f32 %v1535_v55, %v633_v43  ;;  %s1667_s12 = sld [smem:[#allocation2 + $0x13f]]  ;;  %s1014_s13 = smov [#allocation7]  }
  0x8f   :  { %v615_v46 = vmax.f32 %v614_v39, 0.0  ;;  %v625_v47 = vadd.f32 %v624_v36, %v623_v40  ;;  %v627_v50 = vstv %s1568_s14  ;;  %v644_v51 = vstv %s1573_s15  ;;  %s747_s14 = sshll.u32 %s1014_s13, 4  ;;  %s748_s14 = int_to_ptr.vmem [resolvable:$true] %s747_s14 }
  0x90   :  { %v596_v49 = vadd.f32 %v595_v37, %v585_v41  ;;  %v646_v52 = vstv %s1575_s16  ;;  %v636_v0 = vadd.f32 %v635_v44, %v634_v48  ;;  %v645_v56 = vmul.f32 %v1535_v55, %v644_v51  ;;  %s984_s15 = scalar_lea.vmem %s748_s14, 128  ;;  %p989_p12 = scmp.lt.s32.totalorder %s748_s14, %s748_s14 }
  0x91   :  { %v617_v53 = vmul.f32 %v616_v42, %v615_v46  ;;  %v626_v54 = vmax.f32 %v625_v47, 0.0  ;;  %v638_v58 = vstv %s1578_s17  ;;  %v655_v59 = vstv %s1583_s18  ;;  %p985_p11 = scmp.ne.s32.totalorder %s748_s14, %s984_s15  ;;  %p990_p13 = scmp.lt.s32.totalorder %s984_s15, %s984_s15 }
  0x92   :  { %v607_v57 = vadd.f32 %v606_v45, %v596_v49  ;;  %v657_v60 = vstv %s1585_s19  ;;  %v637_v62 = vmax.f32 %v636_v0, 0.0  ;;  %v647_v63 = vadd.f32 %v646_v52, %v645_v56 }
  0x93   :  { %v628_v61 = vmul.f32 %v627_v50, %v626_v54  ;;  %v656_v1 = vmul.f32 %v1535_v55, %v655_v59  ;;  %v649_v3 = vstv %s1588_s20  ;;  %v666_v4 = vstv %s1593_s21  ;;  %p991_p0 = por %p990_p13, %p989_p12 }
  0x94   :  { %v618_v2 = vadd.f32 %v617_v53, %v607_v57  ;;  %v668_v5 = vstv %s1595_s22  ;;  %v639_v6 = vmul.f32 %v638_v58, %v637_v62  ;;  %v648_v7 = vmax.f32 %v647_v63, 0.0 }
  0x95   :  { %v658_v8 = vadd.f32 %v657_v60, %v656_v1  ;;  %v667_v9 = vmul.f32 %v1535_v55, %v666_v4  ;;  %v660_v11 = vstv %s1598_s23  ;;  %v677_v12 = vstv %s1603_s24  ;;  %p992_p1 = pnand %p991_p0, %p985_p11 }
  0x96   :  { %v629_v10 = vadd.f32 %v628_v61, %v618_v2  ;;  %v679_v13 = vstv %s1605_s25  ;;  %v650_v14 = vmul.f32 %v649_v3, %v648_v7  ;;  %v678_v17 = vmul.f32 %v1535_v55, %v677_v12 }
  0x97   :  { %v659_v15 = vmax.f32 %v658_v8, 0.0  ;;  %v669_v16 = vadd.f32 %v668_v5, %v667_v9  ;;  %v671_v19 = vstv %s1608_s26  ;;  %v688_v20 = vstv %s1613_s27 }
  0x98   :  { %v640_v18 = vadd.f32 %v639_v6, %v629_v10  ;;  %v690_v21 = vstv %s1615_s28  ;;  %v680_v24 = vadd.f32 %v679_v13, %v678_v17  ;;  %v689_v25 = vmul.f32 %v1535_v55, %v688_v20 }
  0x99   :  { %v661_v22 = vmul.f32 %v660_v11, %v659_v15  ;;  %v670_v23 = vmax.f32 %v669_v16, 0.0  ;;  %v682_v27 = vstv %s1618_s0  ;;  %v699_v28 = vstv %s1623_s29 }
  0x9a   :  { %v651_v26 = vadd.f32 %v650_v14, %v640_v18  ;;  %v701_v29 = vstv %s1625_s30  ;;  %v681_v31 = vmax.f32 %v680_v24, 0.0  ;;  %v691_v32 = vadd.f32 %v690_v21, %v689_v25 }
  0x9b   :  { %v672_v30 = vmul.f32 %v671_v19, %v670_v23  ;;  %v700_v33 = vmul.f32 %v1535_v55, %v699_v28  ;;  %v693_v35 = vstv %s1628_s3  ;;  %v710_v36 = vstv %s1633_s4 }
  0x9c   :  { %v662_v34 = vadd.f32 %v661_v22, %v651_v26  ;;  %v712_v37 = vstv %s1635_s5  ;;  %v683_v38 = vmul.f32 %v682_v27, %v681_v31  ;;  %v692_v39 = vmax.f32 %v691_v32, 0.0 }
  0x9d   :  { %v702_v40 = vadd.f32 %v701_v29, %v700_v33  ;;  %v711_v41 = vmul.f32 %v1535_v55, %v710_v36  ;;  %v704_v43 = vstv %s1638_s6  ;;  %v721_v44 = vstv %s1643_s7 }
  0x9e   :  { %v673_v42 = vadd.f32 %v672_v30, %v662_v34  ;;  %v723_v45 = vstv %s1645_s8  ;;  %v694_v46 = vmul.f32 %v693_v35, %v692_v39  ;;  %v722_v49 = vmul.f32 %v1535_v55, %v721_v44 }
  0x9f   :  { %v703_v47 = vmax.f32 %v702_v40, 0.0  ;;  %v713_v48 = vadd.f32 %v712_v37, %v711_v41  ;;  %v715_v51 = vstv %s1648_s9  ;;  %v732_v52 = vstv %s1653_s10 }
  0xa0   :  { %v684_v50 = vadd.f32 %v683_v38, %v673_v42  ;;  %v734_v53 = vstv %s1655_s1  ;;  %v724_v56 = vadd.f32 %v723_v45, %v722_v49  ;;  %v733_v57 = vmul.f32 %v1535_v55, %v732_v52 }
  0xa1   :  { %v705_v54 = vmul.f32 %v704_v43, %v703_v47  ;;  %v714_v0 = vmax.f32 %v713_v48, 0.0  ;;  %v726_v59 = vstv %s1661_s11  ;;  %v737_v1 = vstv %s1667_s12 }
  0xa2   :  { %v695_v58 = vadd.f32 %v694_v46, %v684_v50  ;;  %v725_v61 = vmax.f32 %v724_v56, 0.0  ;;  %v735_v62 = vadd.f32 %v734_v53, %v733_v57 }
  0xa3   :  { %v716_v60 = vmul.f32 %v715_v51, %v714_v0 }
  0xa4   :  { %v706_v63 = vadd.f32 %v705_v54, %v695_v58  ;;  %v727_v2 = vmul.f32 %v726_v59, %v725_v61  ;;  %v736_v3 = vmax.f32 %v735_v62, 0.0 }
  0xa6   :  { %v717_v4 = vadd.f32 %v716_v60, %v706_v63  ;;  %v738_v5 = vmul.f32 %v737_v1, %v736_v3 }
  0xa8   :  { %v728_v6 = vadd.f32 %v727_v2, %v717_v4 }
  0xaa   :  { %v739_v7 = vadd.f32 %v738_v5, %v728_v6 }
  0xac   :  { %740 = vst [vmem:[#allocation7] sm:$0xff] %v739_v7 }
  0xad   :  { %995 = shalt.err (!%p992_p1)
}
  0xae   :  { %s996_s18 = scalar_lea.hbm %s1694_s2, 128 }
  0xaf   :  { %p997_p2 = scmp.ne.s32.totalorder %s1694_s2, %s996_s18  ;;  %p1000_p3 = scmp.lt.u32.totalorder %s996_s18, %s1694_s2 }
  0xb1   :  { %p1002_p4 = pnand %p1000_p3, %p997_p2 }
  0xb3   :  { %1005 = shalt.err (!%p1002_p4)
}
  0xb4   :  { %750 = dma.vmem_to_hbm [thread:$0]  %s748_s14, 128, %s1694_s2, [#allocation4]  }
  0xb5   :  { %1010 = dma.done.wait [#allocation4], 128  }
  0xb6   :  { %1011 = vsyncadd [#allocation4], 4294967168 }
  0xb7   :  { %754 = vsyncpa [#allocation3], 1 }
  0xb8   :  { %755 = vsyncpa [#allocation4], 1 }
  0xb9   :  { %756 = vsyncpa [#allocation5], 1 }

</bundles_post_ra>
